<compile_context>
chip_gen: v7x
topology: tpu7x:2x2x1
jax: 0.10.0
libtpu: 0.0.40
codegen_flags: <defaults>
</compile_context>

<pallas_src>
import functools

import jax
import jax.numpy as jnp
from jax import lax
from jax.experimental import pallas as pl
from jax.experimental.pallas import tpu as pltpu

_ONE_SIXTH = 1.0 / 6.0


def _round_up(x, m):
    return ((x + m - 1) // m) * m


def _conv1x1_hswish_padded_kernel(w_ref, b_ref, x_ref, xh_ref, o_ref, tmp_ref, *, hp):
    """Writes one (1, Cout, HB, Wp) row-tile of the *padded* output.

    w_ref  : (Cout, Cin)      f32 SMEM  -- 1x1 conv weights (scalars)
    b_ref  : (Cout,)          f32 SMEM  -- bias (scalars)
    x_ref  : (1, Cin, HB, W)  f32 VMEM  -- input rows [s, s+HB), s = min(r, max_in_r)*HB
    xh_ref : (1, Cin, 8,  W)  f32 VMEM  -- halo slab; its last row is input row r*HB-1
    o_ref  : (1, Cout, HB, Wp) f32 VMEM -- padded output rows [r*HB, r*HB+HB)
    tmp_ref: (HB, Wr)         f32 VMEM  -- column-shift staging, Wr = round_up(Wp, 128)
    """
    r = pl.program_id(1)
    cin = x_ref.shape[1]
    cout = o_ref.shape[1]
    hb = o_ref.shape[2]
    w = x_ref.shape[3]
    wp = o_ref.shape[3]

    row_l = lax.broadcasted_iota(jnp.int32, (hb, w), 0)
    grow = r * hb + row_l                        # global (padded) output row index
    is_row_border = (grow == 0) | (grow >= hp - 1)   # top/bottom border + OOB rows

    for co in range(cout):
        b = b_ref[co]
        # 1x1 conv as scalar-broadcast VPU FMAs (MXU is useless at Cin=Cout=3).
        wv = w_ref[co, 0]
        t = b + wv * x_ref[0, 0]                 # (HB, W): conv of this tile's input rows
        th = b + wv * xh_ref[0, 0, 7:8, :]       # (1,  W): conv of the halo row
        for ci in range(1, cin):
            wv = w_ref[co, ci]
            t = t + wv * x_ref[0, ci]
            th = th + wv * xh_ref[0, ci, 7:8, :]

        # Row shift (+1): padded output local row j uses input local row j-1 of this
        # tile; local row 0 uses the halo row (last input row of the previous tile).
        t_rows = jnp.where(row_l == 0, th, pltpu.roll(t, shift=1, axis=0))

        # hard-swish; division folded into a multiply by 1/6.
        hs = t_rows * jnp.clip(t_rows + 3.0, 0.0, 6.0) * _ONE_SIXTH
        beta = b * jnp.clip(b + 3.0, 0.0, 6.0) * _ONE_SIXTH   # border == hswish(bias)
        hs = jnp.where(is_row_border, beta, hs)

        # Column shift (+1) without unaligned stores: stage hs at lane offset 0 in a
        # 128-multiple-wide scratch, lane-roll by one, then fix the border columns.
        tmp_ref[:, 0:w] = hs
        wide = pltpu.roll(tmp_ref[...], shift=1, axis=1)       # col q <- hs col q-1
        col_l = lax.broadcasted_iota(jnp.int32, wide.shape, 1)
        wide = jnp.where((col_l == 0) | (col_l == wp - 1), beta, wide)
        o_ref[0, co] = wide[:, 0:wp].astype(o_ref.dtype)


def _pick_row_block(h, w, wp, cin, cout, target_bytes=3 << 20):
    """Output row-tile height: multiple of 8, ~target_bytes per block, and no larger
    than the (8-aligned) input height so input blocks never start out of range."""
    per_row = 4 * max(cin * w, cout * wp)
    rows = max(8, (target_bytes // per_row) // 8 * 8)
    h8 = max(8, (h // 8) * 8)
    return int(min(rows, h8))


@jax.jit
def model_forward(x, conv_w, conv_b):
    """x: (N, Cin, H, W) f32; conv_w: (Cout, Cin, 1, 1); conv_b: (Cout,).
    Returns conv(1x1, padding=1) + hard-swish, shape (N, Cout, H+2, W+2)."""
    N, Cin, H, W = x.shape
    Cout = conv_w.shape[0]
    Hp, Wp = H + 2, W + 2

    HB = _pick_row_block(H, W, Wp, Cin, Cout)     # padded-output row-tile height
    RT = pl.cdiv(Hp, HB)                          # row tiles (last one partial)
    max_in_r = pl.cdiv(H, HB) - 1                 # last in-range input row block
    halo_step = HB // 8
    h8_last = pl.cdiv(H, 8) - 1                   # last in-range 8-row halo block
    Wr = _round_up(Wp, 128)                       # lane width of the staging scratch

    w2 = conv_w.reshape(Cout, Cin).astype(jnp.float32)   # 9 scalars -> SMEM
    b1 = conv_b.reshape(Cout).astype(jnp.float32)        # 3 scalars -> SMEM
    x = x.astype(jnp.float32)

    kernel = functools.partial(_conv1x1_hswish_padded_kernel, hp=Hp)

    blk_bytes = 4 * (Cin * HB * W + Cin * 8 * W + Cout * HB * Wp + HB * Wr)
    vmem_limit = int(min(max(4 * blk_bytes, 16 << 20), 64 << 20))

    out = pl.pallas_call(
        kernel,
        out_shape=jax.ShapeDtypeStruct((N, Cout, Hp, Wp), jnp.float32),
        grid=(N, RT),
        in_specs=[
            pl.BlockSpec(memory_space=pltpu.MemorySpace.SMEM),   # weights
            pl.BlockSpec(memory_space=pltpu.MemorySpace.SMEM),   # bias
            # main input row-tile; the clamp keeps the block start in range for the
            # trailing padded-output tiles (their extra rows are border / discarded)
            pl.BlockSpec((1, Cin, HB, W),
                         lambda n, r: (n, 0, jnp.minimum(r, max_in_r), 0)),
            # 8-row halo slab whose last row is input row r*HB - 1 (unused at r == 0)
            pl.BlockSpec((1, Cin, 8, W),
                         lambda n, r: (n, 0, jnp.clip(r * halo_step - 1, 0, h8_last), 0)),
        ],
        out_specs=pl.BlockSpec((1, Cout, HB, Wp), lambda n, r: (n, 0, r, 0)),
        scratch_shapes=[pltpu.VMEM((HB, Wr), jnp.float32)],
        compiler_params=pltpu.CompilerParams(
            dimension_semantics=("parallel", "parallel"),
            vmem_limit_bytes=vmem_limit,
        ),
        cost_estimate=pl.CostEstimate(
            flops=(2 * Cin + 6) * N * Cout * Hp * Wp,
            transcendentals=0,
            bytes_accessed=4 * N * (Cin * H * W + Cout * Hp * Wp),
        ),
    )(w2, b1, x, x)
    return out


def _reference(x, w, b):
    # Pure-JAX reference of the same math for a correctness check.
    xp = jnp.pad(x, ((0, 0), (0, 0), (1, 1), (1, 1)))
    t1 = jnp.einsum("nchw,oc->nohw", xp, w.reshape(w.shape[0], -1))
    t1 = t1 + b.reshape(1, -1, 1, 1)
    return t1 * jnp.clip(t1 + 3.0, 0.0, 6.0) / 6.0


if __name__ == "__main__":
    key = jax.random.PRNGKey(0)
    kx, kw, kb = jax.random.split(key, 3)

    # Small shapes consistent with the module (Cin = Cout = 3, 64x64 spatial).
    N, Cin, H, W = 2, 3, 64, 64
    Cout = 3

    x = jax.random.normal(kx, (N, Cin, H, W), dtype=jnp.float32)
    # Deterministic, PyTorch-like uniform init (kaiming-uniform bound, 1x1 conv).
    bound = 1.0 / (Cin ** 0.5)
    conv_w = jax.random.uniform(kw, (Cout, Cin, 1, 1), jnp.float32, -bound, bound)
    conv_b = jax.random.uniform(kb, (Cout,), jnp.float32, -bound, bound)

    out = model_forward(x, conv_w, conv_b)
    out = jax.block_until_ready(out)

    ref = _reference(x, conv_w, conv_b)
    assert out.shape == (N, Cout, H + 2, W + 2), out.shape
    assert jnp.allclose(out, ref, atol=1e-5, rtol=1e-5), "mismatch vs reference"

    print("KERNEL_OK")
</pallas_src>

<mosaic_0001>
module attributes {stable_mosaic.version = 11 : i64} {
  func.func @_conv1x1_hswish_padded_kernel(%arg0: i32, %arg1: i32, %arg2: memref<3x3xf32, #tpu.memory_space<smem>>, %arg3: memref<3xf32, #tpu.memory_space<smem>>, %arg4: memref<1x3x64x64xf32, #tpu.memory_space<vmem>>, %arg5: memref<1x3x8x64xf32, #tpu.memory_space<vmem>>, %arg6: memref<1x3x64x66xf32, #tpu.memory_space<vmem>>, %arg7: memref<64x128xf32, #tpu.memory_space<vmem>>) attributes {dimension_semantics = [#tpu.dimension_semantics<parallel>, #tpu.dimension_semantics<parallel>], iteration_bounds = array<i64: 2, 2>, scalar_prefetch = 0 : i64, scratch_operands = 1 : i64, tpu.core_type = #tpu.core_type<tc>, window_params = [{transform_indices = @transform_0, window_bounds = array<i64: 3, 3>}, {transform_indices = @transform_1, window_bounds = array<i64: 3>}, {transform_indices = @transform_2, window_bounds = array<i64: 1, 3, 64, 64>}, {transform_indices = @transform_3, window_bounds = array<i64: 1, 3, 8, 64>}, {transform_indices = @transform_4, window_bounds = array<i64: 1, 3, 64, 66>}]} {
    %0 = tpu.iota {dimensions = array<i32: 0>} : vector<64x64xi32>
    %c64_i32 = arith.constant 64 : i32
    %1 = arith.muli %arg1, %c64_i32 : i32
    %2 = vector.broadcast %1 : i32 to vector<64x64xi32>
    %3 = arith.addi %2, %0 : vector<64x64xi32>
    %c0_i32 = arith.constant 0 : i32
    %4 = vector.broadcast %c0_i32 : i32 to vector<64x64xi32>
    %5 = arith.cmpi eq, %3, %4 : vector<64x64xi32>
    %c65_i32 = arith.constant 65 : i32
    %6 = vector.broadcast %c65_i32 : i32 to vector<64x64xi32>
    %7 = arith.cmpi sge, %3, %6 : vector<64x64xi32>
    %8 = arith.ori %5, %7 : vector<64x64xi1>
    %c0 = arith.constant 0 : index
    %9 = memref.load %arg3[%c0] : memref<3xf32, #tpu.memory_space<smem>>
    %c0_0 = arith.constant 0 : index
    %c0_1 = arith.constant 0 : index
    %10 = memref.load %arg2[%c0_0, %c0_1] : memref<3x3xf32, #tpu.memory_space<smem>>
    %c0_2 = arith.constant 0 : index
    %c0_3 = arith.constant 0 : index
    %c0_4 = arith.constant 0 : index
    %c0_5 = arith.constant 0 : index
    %11 = vector.load %arg4[%c0_2, %c0_3, %c0_4, %c0_5] : memref<1x3x64x64xf32, #tpu.memory_space<vmem>>, vector<1x1x64x64xf32>
    %12 = vector.shape_cast %11 : vector<1x1x64x64xf32> to vector<64x64xf32>
    %13 = vector.broadcast %10 : f32 to vector<64x64xf32>
    %14 = arith.mulf %13, %12 : vector<64x64xf32>
    %15 = vector.broadcast %9 : f32 to vector<64x64xf32>
    %16 = arith.addf %15, %14 : vector<64x64xf32>
    %c0_6 = arith.constant 0 : index
    %c0_7 = arith.constant 0 : index
    %c7 = arith.constant 7 : index
    %c0_8 = arith.constant 0 : index
    %17 = vector.load %arg5[%c0_6, %c0_7, %c7, %c0_8] : memref<1x3x8x64xf32, #tpu.memory_space<vmem>>, vector<1x1x1x64xf32>
    %18 = vector.shape_cast %17 : vector<1x1x1x64xf32> to vector<1x64xf32>
    %19 = vector.broadcast %10 : f32 to vector<1x64xf32>
    %20 = arith.mulf %19, %18 : vector<1x64xf32>
    %21 = vector.broadcast %9 : f32 to vector<1x64xf32>
    %22 = arith.addf %21, %20 : vector<1x64xf32>
    %c0_9 = arith.constant 0 : index
    %c1 = arith.constant 1 : index
    %23 = memref.load %arg2[%c0_9, %c1] : memref<3x3xf32, #tpu.memory_space<smem>>
    %c0_10 = arith.constant 0 : index
    %c1_11 = arith.constant 1 : index
    %c0_12 = arith.constant 0 : index
    %c0_13 = arith.constant 0 : index
    %24 = vector.load %arg4[%c0_10, %c1_11, %c0_12, %c0_13] : memref<1x3x64x64xf32, #tpu.memory_space<vmem>>, vector<1x1x64x64xf32>
    %25 = vector.shape_cast %24 : vector<1x1x64x64xf32> to vector<64x64xf32>
    %26 = vector.broadcast %23 : f32 to vector<64x64xf32>
    %27 = arith.mulf %26, %25 : vector<64x64xf32>
    %28 = arith.addf %16, %27 : vector<64x64xf32>
    %c0_14 = arith.constant 0 : index
    %c1_15 = arith.constant 1 : index
    %c7_16 = arith.constant 7 : index
    %c0_17 = arith.constant 0 : index
    %29 = vector.load %arg5[%c0_14, %c1_15, %c7_16, %c0_17] : memref<1x3x8x64xf32, #tpu.memory_space<vmem>>, vector<1x1x1x64xf32>
    %30 = vector.shape_cast %29 : vector<1x1x1x64xf32> to vector<1x64xf32>
    %31 = vector.broadcast %23 : f32 to vector<1x64xf32>
    %32 = arith.mulf %31, %30 : vector<1x64xf32>
    %33 = arith.addf %22, %32 : vector<1x64xf32>
    %c0_18 = arith.constant 0 : index
    %c2 = arith.constant 2 : index
    %34 = memref.load %arg2[%c0_18, %c2] : memref<3x3xf32, #tpu.memory_space<smem>>
    %c0_19 = arith.constant 0 : index
    %c2_20 = arith.constant 2 : index
    %c0_21 = arith.constant 0 : index
    %c0_22 = arith.constant 0 : index
    %35 = vector.load %arg4[%c0_19, %c2_20, %c0_21, %c0_22] : memref<1x3x64x64xf32, #tpu.memory_space<vmem>>, vector<1x1x64x64xf32>
    %36 = vector.shape_cast %35 : vector<1x1x64x64xf32> to vector<64x64xf32>
    %37 = vector.broadcast %34 : f32 to vector<64x64xf32>
    %38 = arith.mulf %37, %36 : vector<64x64xf32>
    %39 = arith.addf %28, %38 : vector<64x64xf32>
    %c0_23 = arith.constant 0 : index
    %c2_24 = arith.constant 2 : index
    %c7_25 = arith.constant 7 : index
    %c0_26 = arith.constant 0 : index
    %40 = vector.load %arg5[%c0_23, %c2_24, %c7_25, %c0_26] : memref<1x3x8x64xf32, #tpu.memory_space<vmem>>, vector<1x1x1x64xf32>
    %41 = vector.shape_cast %40 : vector<1x1x1x64xf32> to vector<1x64xf32>
    %42 = vector.broadcast %34 : f32 to vector<1x64xf32>
    %43 = arith.mulf %42, %41 : vector<1x64xf32>
    %44 = arith.addf %33, %43 : vector<1x64xf32>
    %c0_i32_27 = arith.constant 0 : i32
    %45 = vector.broadcast %c0_i32_27 : i32 to vector<64x64xi32>
    %46 = arith.cmpi eq, %0, %45 : vector<64x64xi32>
    %c1_i32 = arith.constant 1 : i32
    %47 = tpu.dynamic_rotate %39 by %c1_i32 dim 0 : vector<64x64xf32>, i32 -> vector<64x64xf32>
    %48 = vector.shape_cast %44 : vector<1x64xf32> to vector<1x64xf32>
    %49 = vector.broadcast %48 : vector<1x64xf32> to vector<64x64xf32>
    %50 = arith.select %46, %49, %47 : vector<64x64xi1>, vector<64x64xf32>
    %cst = arith.constant 3.000000e+00 : f32
    %51 = vector.broadcast %cst : f32 to vector<64x64xf32>
    %52 = arith.addf %50, %51 : vector<64x64xf32>
    %cst_28 = arith.constant 0.000000e+00 : f32
    %cst_29 = arith.constant 6.000000e+00 : f32
    %53 = vector.broadcast %cst_28 : f32 to vector<64x64xf32>
    %54 = arith.maximumf %53, %52 : vector<64x64xf32>
    %55 = vector.broadcast %cst_29 : f32 to vector<64x64xf32>
    %56 = arith.minimumf %55, %54 : vector<64x64xf32>
    %57 = arith.mulf %50, %56 : vector<64x64xf32>
    %cst_30 = arith.constant 0.166666672 : f32
    %58 = vector.broadcast %cst_30 : f32 to vector<64x64xf32>
    %59 = arith.mulf %57, %58 : vector<64x64xf32>
    %cst_31 = arith.constant 3.000000e+00 : f32
    %60 = arith.addf %9, %cst_31 : f32
    %cst_32 = arith.constant 0.000000e+00 : f32
    %cst_33 = arith.constant 6.000000e+00 : f32
    %61 = arith.maximumf %cst_32, %60 : f32
    %62 = arith.minimumf %cst_33, %61 : f32
    %63 = arith.mulf %9, %62 : f32
    %cst_34 = arith.constant 0.166666672 : f32
    %64 = arith.mulf %63, %cst_34 : f32
    %65 = vector.broadcast %64 : f32 to vector<64x64xf32>
    %66 = arith.select %8, %65, %59 : vector<64x64xi1>, vector<64x64xf32>
    %c0_35 = arith.constant 0 : index
    %c0_36 = arith.constant 0 : index
    %67 = vector.load %arg7[%c0_35, %c0_36] : memref<64x128xf32, #tpu.memory_space<vmem>>, vector<64x64xf32>
    tpu.vector_store %arg7[%c0_35, %c0_36], %66 {strides = array<i32>} : memref<64x128xf32, #tpu.memory_space<vmem>>, vector<64x64xf32>,
    %c0_37 = arith.constant 0 : index
    %c0_38 = arith.constant 0 : index
    %68 = vector.load %arg7[%c0_37, %c0_38] : memref<64x128xf32, #tpu.memory_space<vmem>>, vector<64x128xf32>
    %c1_i32_39 = arith.constant 1 : i32
    %69 = tpu.dynamic_rotate %68 by %c1_i32_39 dim 1 : vector<64x128xf32>, i32 -> vector<64x128xf32>
    %70 = tpu.iota {dimensions = array<i32: 1>} : vector<64x128xi32>
    %c0_i32_40 = arith.constant 0 : i32
    %71 = vector.broadcast %c0_i32_40 : i32 to vector<64x128xi32>
    %72 = arith.cmpi eq, %70, %71 : vector<64x128xi32>
    %c65_i32_41 = arith.constant 65 : i32
    %73 = vector.broadcast %c65_i32_41 : i32 to vector<64x128xi32>
    %74 = arith.cmpi eq, %70, %73 : vector<64x128xi32>
    %75 = arith.ori %72, %74 : vector<64x128xi1>
    %76 = vector.broadcast %64 : f32 to vector<64x128xf32>
    %77 = arith.select %75, %76, %69 : vector<64x128xi1>, vector<64x128xf32>
    %78 = vector.extract_strided_slice %77 {offsets = [0, 0], sizes = [64, 66], strides = [1, 1]} : vector<64x128xf32> to vector<64x66xf32>
    %c0_42 = arith.constant 0 : index
    %c0_43 = arith.constant 0 : index
    %c0_44 = arith.constant 0 : index
    %c0_45 = arith.constant 0 : index
    %79 = vector.load %arg6[%c0_42, %c0_43, %c0_44, %c0_45] : memref<1x3x64x66xf32, #tpu.memory_space<vmem>>, vector<1x1x64x66xf32>
    %80 = vector.shape_cast %79 : vector<1x1x64x66xf32> to vector<64x66xf32>
    %81 = vector.shape_cast %78 : vector<64x66xf32> to vector<1x1x64x66xf32>
    tpu.vector_store %arg6[%c0_42, %c0_43, %c0_44, %c0_45], %81 {strides = array<i32>} : memref<1x3x64x66xf32, #tpu.memory_space<vmem>>, vector<1x1x64x66xf32>,
    %c1_46 = arith.constant 1 : index
    %82 = memref.load %arg3[%c1_46] : memref<3xf32, #tpu.memory_space<smem>>
    %c1_47 = arith.constant 1 : index
    %c0_48 = arith.constant 0 : index
    %83 = memref.load %arg2[%c1_47, %c0_48] : memref<3x3xf32, #tpu.memory_space<smem>>
    %c0_49 = arith.constant 0 : index
    %c0_50 = arith.constant 0 : index
    %c0_51 = arith.constant 0 : index
    %c0_52 = arith.constant 0 : index
    %84 = vector.load %arg4[%c0_49, %c0_50, %c0_51, %c0_52] : memref<1x3x64x64xf32, #tpu.memory_space<vmem>>, vector<1x1x64x64xf32>
    %85 = vector.shape_cast %84 : vector<1x1x64x64xf32> to vector<64x64xf32>
    %86 = vector.broadcast %83 : f32 to vector<64x64xf32>
    %87 = arith.mulf %86, %85 : vector<64x64xf32>
    %88 = vector.broadcast %82 : f32 to vector<64x64xf32>
    %89 = arith.addf %88, %87 : vector<64x64xf32>
    %c0_53 = arith.constant 0 : index
    %c0_54 = arith.constant 0 : index
    %c7_55 = arith.constant 7 : index
    %c0_56 = arith.constant 0 : index
    %90 = vector.load %arg5[%c0_53, %c0_54, %c7_55, %c0_56] : memref<1x3x8x64xf32, #tpu.memory_space<vmem>>, vector<1x1x1x64xf32>
    %91 = vector.shape_cast %90 : vector<1x1x1x64xf32> to vector<1x64xf32>
    %92 = vector.broadcast %83 : f32 to vector<1x64xf32>
    %93 = arith.mulf %92, %91 : vector<1x64xf32>
    %94 = vector.broadcast %82 : f32 to vector<1x64xf32>
    %95 = arith.addf %94, %93 : vector<1x64xf32>
    %c1_57 = arith.constant 1 : index
    %c1_58 = arith.constant 1 : index
    %96 = memref.load %arg2[%c1_57, %c1_58] : memref<3x3xf32, #tpu.memory_space<smem>>
    %c0_59 = arith.constant 0 : index
    %c1_60 = arith.constant 1 : index
    %c0_61 = arith.constant 0 : index
    %c0_62 = arith.constant 0 : index
    %97 = vector.load %arg4[%c0_59, %c1_60, %c0_61, %c0_62] : memref<1x3x64x64xf32, #tpu.memory_space<vmem>>, vector<1x1x64x64xf32>
    %98 = vector.shape_cast %97 : vector<1x1x64x64xf32> to vector<64x64xf32>
    %99 = vector.broadcast %96 : f32 to vector<64x64xf32>
    %100 = arith.mulf %99, %98 : vector<64x64xf32>
    %101 = arith.addf %89, %100 : vector<64x64xf32>
    %c0_63 = arith.constant 0 : index
    %c1_64 = arith.constant 1 : index
    %c7_65 = arith.constant 7 : index
    %c0_66 = arith.constant 0 : index
    %102 = vector.load %arg5[%c0_63, %c1_64, %c7_65, %c0_66] : memref<1x3x8x64xf32, #tpu.memory_space<vmem>>, vector<1x1x1x64xf32>
    %103 = vector.shape_cast %102 : vector<1x1x1x64xf32> to vector<1x64xf32>
    %104 = vector.broadcast %96 : f32 to vector<1x64xf32>
    %105 = arith.mulf %104, %103 : vector<1x64xf32>
    %106 = arith.addf %95, %105 : vector<1x64xf32>
    %c1_67 = arith.constant 1 : index
    %c2_68 = arith.constant 2 : index
    %107 = memref.load %arg2[%c1_67, %c2_68] : memref<3x3xf32, #tpu.memory_space<smem>>
    %c0_69 = arith.constant 0 : index
    %c2_70 = arith.constant 2 : index
    %c0_71 = arith.constant 0 : index
    %c0_72 = arith.constant 0 : index
    %108 = vector.load %arg4[%c0_69, %c2_70, %c0_71, %c0_72] : memref<1x3x64x64xf32, #tpu.memory_space<vmem>>, vector<1x1x64x64xf32>
    %109 = vector.shape_cast %108 : vector<1x1x64x64xf32> to vector<64x64xf32>
    %110 = vector.broadcast %107 : f32 to vector<64x64xf32>
    %111 = arith.mulf %110, %109 : vector<64x64xf32>
    %112 = arith.addf %101, %111 : vector<64x64xf32>
    %c0_73 = arith.constant 0 : index
    %c2_74 = arith.constant 2 : index
    %c7_75 = arith.constant 7 : index
    %c0_76 = arith.constant 0 : index
    %113 = vector.load %arg5[%c0_73, %c2_74, %c7_75, %c0_76] : memref<1x3x8x64xf32, #tpu.memory_space<vmem>>, vector<1x1x1x64xf32>
    %114 = vector.shape_cast %113 : vector<1x1x1x64xf32> to vector<1x64xf32>
    %115 = vector.broadcast %107 : f32 to vector<1x64xf32>
    %116 = arith.mulf %115, %114 : vector<1x64xf32>
    %117 = arith.addf %106, %116 : vector<1x64xf32>
    %c0_i32_77 = arith.constant 0 : i32
    %118 = vector.broadcast %c0_i32_77 : i32 to vector<64x64xi32>
    %119 = arith.cmpi eq, %0, %118 : vector<64x64xi32>
    %c1_i32_78 = arith.constant 1 : i32
    %120 = tpu.dynamic_rotate %112 by %c1_i32_78 dim 0 : vector<64x64xf32>, i32 -> vector<64x64xf32>
    %121 = vector.shape_cast %117 : vector<1x64xf32> to vector<1x64xf32>
    %122 = vector.broadcast %121 : vector<1x64xf32> to vector<64x64xf32>
    %123 = arith.select %119, %122, %120 : vector<64x64xi1>, vector<64x64xf32>
    %cst_79 = arith.constant 3.000000e+00 : f32
    %124 = vector.broadcast %cst_79 : f32 to vector<64x64xf32>
    %125 = arith.addf %123, %124 : vector<64x64xf32>
    %cst_80 = arith.constant 0.000000e+00 : f32
    %cst_81 = arith.constant 6.000000e+00 : f32
    %126 = vector.broadcast %cst_80 : f32 to vector<64x64xf32>
    %127 = arith.maximumf %126, %125 : vector<64x64xf32>
    %128 = vector.broadcast %cst_81 : f32 to vector<64x64xf32>
    %129 = arith.minimumf %128, %127 : vector<64x64xf32>
    %130 = arith.mulf %123, %129 : vector<64x64xf32>
    %cst_82 = arith.constant 0.166666672 : f32
    %131 = vector.broadcast %cst_82 : f32 to vector<64x64xf32>
    %132 = arith.mulf %130, %131 : vector<64x64xf32>
    %cst_83 = arith.constant 3.000000e+00 : f32
    %133 = arith.addf %82, %cst_83 : f32
    %cst_84 = arith.constant 0.000000e+00 : f32
    %cst_85 = arith.constant 6.000000e+00 : f32
    %134 = arith.maximumf %cst_84, %133 : f32
    %135 = arith.minimumf %cst_85, %134 : f32
    %136 = arith.mulf %82, %135 : f32
    %cst_86 = arith.constant 0.166666672 : f32
    %137 = arith.mulf %136, %cst_86 : f32
    %138 = vector.broadcast %137 : f32 to vector<64x64xf32>
    %139 = arith.select %8, %138, %132 : vector<64x64xi1>, vector<64x64xf32>
    %c0_87 = arith.constant 0 : index
    %c0_88 = arith.constant 0 : index
    %140 = vector.load %arg7[%c0_87, %c0_88] : memref<64x128xf32, #tpu.memory_space<vmem>>, vector<64x64xf32>
    tpu.vector_store %arg7[%c0_87, %c0_88], %139 {strides = array<i32>} : memref<64x128xf32, #tpu.memory_space<vmem>>, vector<64x64xf32>,
    %c0_89 = arith.constant 0 : index
    %c0_90 = arith.constant 0 : index
    %141 = vector.load %arg7[%c0_89, %c0_90] : memref<64x128xf32, #tpu.memory_space<vmem>>, vector<64x128xf32>
    %c1_i32_91 = arith.constant 1 : i32
    %142 = tpu.dynamic_rotate %141 by %c1_i32_91 dim 1 : vector<64x128xf32>, i32 -> vector<64x128xf32>
    %143 = tpu.iota {dimensions = array<i32: 1>} : vector<64x128xi32>
    %c0_i32_92 = arith.constant 0 : i32
    %144 = vector.broadcast %c0_i32_92 : i32 to vector<64x128xi32>
    %145 = arith.cmpi eq, %143, %144 : vector<64x128xi32>
    %c65_i32_93 = arith.constant 65 : i32
    %146 = vector.broadcast %c65_i32_93 : i32 to vector<64x128xi32>
    %147 = arith.cmpi eq, %143, %146 : vector<64x128xi32>
    %148 = arith.ori %145, %147 : vector<64x128xi1>
    %149 = vector.broadcast %137 : f32 to vector<64x128xf32>
    %150 = arith.select %148, %149, %142 : vector<64x128xi1>, vector<64x128xf32>
    %151 = vector.extract_strided_slice %150 {offsets = [0, 0], sizes = [64, 66], strides = [1, 1]} : vector<64x128xf32> to vector<64x66xf32>
    %c0_94 = arith.constant 0 : index
    %c1_95 = arith.constant 1 : index
    %c0_96 = arith.constant 0 : index
    %c0_97 = arith.constant 0 : index
    %152 = vector.load %arg6[%c0_94, %c1_95, %c0_96, %c0_97] : memref<1x3x64x66xf32, #tpu.memory_space<vmem>>, vector<1x1x64x66xf32>
    %153 = vector.shape_cast %152 : vector<1x1x64x66xf32> to vector<64x66xf32>
    %154 = vector.shape_cast %151 : vector<64x66xf32> to vector<1x1x64x66xf32>
    tpu.vector_store %arg6[%c0_94, %c1_95, %c0_96, %c0_97], %154 {strides = array<i32>} : memref<1x3x64x66xf32, #tpu.memory_space<vmem>>, vector<1x1x64x66xf32>,
    %c2_98 = arith.constant 2 : index
    %155 = memref.load %arg3[%c2_98] : memref<3xf32, #tpu.memory_space<smem>>
    %c2_99 = arith.constant 2 : index
    %c0_100 = arith.constant 0 : index
    %156 = memref.load %arg2[%c2_99, %c0_100] : memref<3x3xf32, #tpu.memory_space<smem>>
    %c0_101 = arith.constant 0 : index
    %c0_102 = arith.constant 0 : index
    %c0_103 = arith.constant 0 : index
    %c0_104 = arith.constant 0 : index
    %157 = vector.load %arg4[%c0_101, %c0_102, %c0_103, %c0_104] : memref<1x3x64x64xf32, #tpu.memory_space<vmem>>, vector<1x1x64x64xf32>
    %158 = vector.shape_cast %157 : vector<1x1x64x64xf32> to vector<64x64xf32>
    %159 = vector.broadcast %156 : f32 to vector<64x64xf32>
    %160 = arith.mulf %159, %158 : vector<64x64xf32>
    %161 = vector.broadcast %155 : f32 to vector<64x64xf32>
    %162 = arith.addf %161, %160 : vector<64x64xf32>
    %c0_105 = arith.constant 0 : index
    %c0_106 = arith.constant 0 : index
    %c7_107 = arith.constant 7 : index
    %c0_108 = arith.constant 0 : index
    %163 = vector.load %arg5[%c0_105, %c0_106, %c7_107, %c0_108] : memref<1x3x8x64xf32, #tpu.memory_space<vmem>>, vector<1x1x1x64xf32>
    %164 = vector.shape_cast %163 : vector<1x1x1x64xf32> to vector<1x64xf32>
    %165 = vector.broadcast %156 : f32 to vector<1x64xf32>
    %166 = arith.mulf %165, %164 : vector<1x64xf32>
    %167 = vector.broadcast %155 : f32 to vector<1x64xf32>
    %168 = arith.addf %167, %166 : vector<1x64xf32>
    %c2_109 = arith.constant 2 : index
    %c1_110 = arith.constant 1 : index
    %169 = memref.load %arg2[%c2_109, %c1_110] : memref<3x3xf32, #tpu.memory_space<smem>>
    %c0_111 = arith.constant 0 : index
    %c1_112 = arith.constant 1 : index
    %c0_113 = arith.constant 0 : index
    %c0_114 = arith.constant 0 : index
    %170 = vector.load %arg4[%c0_111, %c1_112, %c0_113, %c0_114] : memref<1x3x64x64xf32, #tpu.memory_space<vmem>>, vector<1x1x64x64xf32>
    %171 = vector.shape_cast %170 : vector<1x1x64x64xf32> to vector<64x64xf32>
    %172 = vector.broadcast %169 : f32 to vector<64x64xf32>
    %173 = arith.mulf %172, %171 : vector<64x64xf32>
    %174 = arith.addf %162, %173 : vector<64x64xf32>
    %c0_115 = arith.constant 0 : index
    %c1_116 = arith.constant 1 : index
    %c7_117 = arith.constant 7 : index
    %c0_118 = arith.constant 0 : index
    %175 = vector.load %arg5[%c0_115, %c1_116, %c7_117, %c0_118] : memref<1x3x8x64xf32, #tpu.memory_space<vmem>>, vector<1x1x1x64xf32>
    %176 = vector.shape_cast %175 : vector<1x1x1x64xf32> to vector<1x64xf32>
    %177 = vector.broadcast %169 : f32 to vector<1x64xf32>
    %178 = arith.mulf %177, %176 : vector<1x64xf32>
    %179 = arith.addf %168, %178 : vector<1x64xf32>
    %c2_119 = arith.constant 2 : index
    %c2_120 = arith.constant 2 : index
    %180 = memref.load %arg2[%c2_119, %c2_120] : memref<3x3xf32, #tpu.memory_space<smem>>
    %c0_121 = arith.constant 0 : index
    %c2_122 = arith.constant 2 : index
    %c0_123 = arith.constant 0 : index
    %c0_124 = arith.constant 0 : index
    %181 = vector.load %arg4[%c0_121, %c2_122, %c0_123, %c0_124] : memref<1x3x64x64xf32, #tpu.memory_space<vmem>>, vector<1x1x64x64xf32>
    %182 = vector.shape_cast %181 : vector<1x1x64x64xf32> to vector<64x64xf32>
    %183 = vector.broadcast %180 : f32 to vector<64x64xf32>
    %184 = arith.mulf %183, %182 : vector<64x64xf32>
    %185 = arith.addf %174, %184 : vector<64x64xf32>
    %c0_125 = arith.constant 0 : index
    %c2_126 = arith.constant 2 : index
    %c7_127 = arith.constant 7 : index
    %c0_128 = arith.constant 0 : index
    %186 = vector.load %arg5[%c0_125, %c2_126, %c7_127, %c0_128] : memref<1x3x8x64xf32, #tpu.memory_space<vmem>>, vector<1x1x1x64xf32>
    %187 = vector.shape_cast %186 : vector<1x1x1x64xf32> to vector<1x64xf32>
    %188 = vector.broadcast %180 : f32 to vector<1x64xf32>
    %189 = arith.mulf %188, %187 : vector<1x64xf32>
    %190 = arith.addf %179, %189 : vector<1x64xf32>
    %c0_i32_129 = arith.constant 0 : i32
    %191 = vector.broadcast %c0_i32_129 : i32 to vector<64x64xi32>
    %192 = arith.cmpi eq, %0, %191 : vector<64x64xi32>
    %c1_i32_130 = arith.constant 1 : i32
    %193 = tpu.dynamic_rotate %185 by %c1_i32_130 dim 0 : vector<64x64xf32>, i32 -> vector<64x64xf32>
    %194 = vector.shape_cast %190 : vector<1x64xf32> to vector<1x64xf32>
    %195 = vector.broadcast %194 : vector<1x64xf32> to vector<64x64xf32>
    %196 = arith.select %192, %195, %193 : vector<64x64xi1>, vector<64x64xf32>
    %cst_131 = arith.constant 3.000000e+00 : f32
    %197 = vector.broadcast %cst_131 : f32 to vector<64x64xf32>
    %198 = arith.addf %196, %197 : vector<64x64xf32>
    %cst_132 = arith.constant 0.000000e+00 : f32
    %cst_133 = arith.constant 6.000000e+00 : f32
    %199 = vector.broadcast %cst_132 : f32 to vector<64x64xf32>
    %200 = arith.maximumf %199, %198 : vector<64x64xf32>
    %201 = vector.broadcast %cst_133 : f32 to vector<64x64xf32>
    %202 = arith.minimumf %201, %200 : vector<64x64xf32>
    %203 = arith.mulf %196, %202 : vector<64x64xf32>
    %cst_134 = arith.constant 0.166666672 : f32
    %204 = vector.broadcast %cst_134 : f32 to vector<64x64xf32>
    %205 = arith.mulf %203, %204 : vector<64x64xf32>
    %cst_135 = arith.constant 3.000000e+00 : f32
    %206 = arith.addf %155, %cst_135 : f32
    %cst_136 = arith.constant 0.000000e+00 : f32
    %cst_137 = arith.constant 6.000000e+00 : f32
    %207 = arith.maximumf %cst_136, %206 : f32
    %208 = arith.minimumf %cst_137, %207 : f32
    %209 = arith.mulf %155, %208 : f32
    %cst_138 = arith.constant 0.166666672 : f32
    %210 = arith.mulf %209, %cst_138 : f32
    %211 = vector.broadcast %210 : f32 to vector<64x64xf32>
    %212 = arith.select %8, %211, %205 : vector<64x64xi1>, vector<64x64xf32>
    %c0_139 = arith.constant 0 : index
    %c0_140 = arith.constant 0 : index
    %213 = vector.load %arg7[%c0_139, %c0_140] : memref<64x128xf32, #tpu.memory_space<vmem>>, vector<64x64xf32>
    tpu.vector_store %arg7[%c0_139, %c0_140], %212 {strides = array<i32>} : memref<64x128xf32, #tpu.memory_space<vmem>>, vector<64x64xf32>,
    %c0_141 = arith.constant 0 : index
    %c0_142 = arith.constant 0 : index
    %214 = vector.load %arg7[%c0_141, %c0_142] : memref<64x128xf32, #tpu.memory_space<vmem>>, vector<64x128xf32>
    %c1_i32_143 = arith.constant 1 : i32
    %215 = tpu.dynamic_rotate %214 by %c1_i32_143 dim 1 : vector<64x128xf32>, i32 -> vector<64x128xf32>
    %216 = tpu.iota {dimensions = array<i32: 1>} : vector<64x128xi32>
    %c0_i32_144 = arith.constant 0 : i32
    %217 = vector.broadcast %c0_i32_144 : i32 to vector<64x128xi32>
    %218 = arith.cmpi eq, %216, %217 : vector<64x128xi32>
    %c65_i32_145 = arith.constant 65 : i32
    %219 = vector.broadcast %c65_i32_145 : i32 to vector<64x128xi32>
    %220 = arith.cmpi eq, %216, %219 : vector<64x128xi32>
    %221 = arith.ori %218, %220 : vector<64x128xi1>
    %222 = vector.broadcast %210 : f32 to vector<64x128xf32>
    %223 = arith.select %221, %222, %215 : vector<64x128xi1>, vector<64x128xf32>
    %224 = vector.extract_strided_slice %223 {offsets = [0, 0], sizes = [64, 66], strides = [1, 1]} : vector<64x128xf32> to vector<64x66xf32>
    %c0_146 = arith.constant 0 : index
    %c2_147 = arith.constant 2 : index
    %c0_148 = arith.constant 0 : index
    %c0_149 = arith.constant 0 : index
    %225 = vector.load %arg6[%c0_146, %c2_147, %c0_148, %c0_149] : memref<1x3x64x66xf32, #tpu.memory_space<vmem>>, vector<1x1x64x66xf32>
    %226 = vector.shape_cast %225 : vector<1x1x64x66xf32> to vector<64x66xf32>
    %227 = vector.shape_cast %224 : vector<64x66xf32> to vector<1x1x64x66xf32>
    tpu.vector_store %arg6[%c0_146, %c2_147, %c0_148, %c0_149], %227 {strides = array<i32>} : memref<1x3x64x66xf32, #tpu.memory_space<vmem>>, vector<1x1x64x66xf32>,
    return
  }
  func.func @transform_0(%arg0: i32, %arg1: i32) -> (i32, i32) {
    %c0_i32 = arith.constant 0 : i32
    %c0_i32_0 = arith.constant 0 : i32
    %c0_i32_1 = arith.constant 0 : i32
    return %c0_i32, %c0_i32_0 : i32, i32
  }
  func.func @transform_1(%arg0: i32, %arg1: i32) -> i32 {
    %c0_i32 = arith.constant 0 : i32
    %c0_i32_0 = arith.constant 0 : i32
    return %c0_i32 : i32
  }
  func.func @transform_2(%arg0: i32, %arg1: i32) -> (i32, i32, i32, i32) {
    %c0_i32 = arith.constant 0 : i32
    %0 = arith.minsi %arg1, %c0_i32 : i32
    %c0_i32_0 = arith.constant 0 : i32
    %c0_i32_1 = arith.constant 0 : i32
    %c0_i32_2 = arith.constant 0 : i32
    return %arg0, %c0_i32_0, %0, %c0_i32_1 : i32, i32, i32, i32
  }
  func.func @transform_3(%arg0: i32, %arg1: i32) -> (i32, i32, i32, i32) {
    %c8_i32 = arith.constant 8 : i32
    %0 = arith.muli %arg1, %c8_i32 : i32
    %c1_i32 = arith.constant 1 : i32
    %1 = arith.subi %0, %c1_i32 : i32
    %c0_i32 = arith.constant 0 : i32
    %c7_i32 = arith.constant 7 : i32
    %2 = arith.maxsi %c0_i32, %1 : i32
    %3 = arith.minsi %c7_i32, %2 : i32
    %c0_i32_0 = arith.constant 0 : i32
    %c0_i32_1 = arith.constant 0 : i32
    %c0_i32_2 = arith.constant 0 : i32
    return %arg0, %c0_i32_0, %3, %c0_i32_1 : i32, i32, i32, i32
  }
  func.func @transform_4(%arg0: i32, %arg1: i32) -> (i32, i32, i32, i32) {
    %c0_i32 = arith.constant 0 : i32
    %c0_i32_0 = arith.constant 0 : i32
    %c0_i32_1 = arith.constant 0 : i32
    return %arg0, %c0_i32, %arg1, %c0_i32_0 : i32, i32, i32, i32
  }
}

</mosaic_0001>

<bundles_post_ra>
// kernel: model_forward.1
= control target key start
LH: loop header
LB: loop body
LE: loop exit
PB: predicated region body
PF: predicated region fallthrough
CT: control target
= control target key end

     0   :  { %s3376_s0 = inlined_call_operand.vmem [shape: f32[3,3], index: 0, kind: input, shape index: {}]   ;;  %s3377_s1 = inlined_call_operand.vmem [shape: f32[3], index: 1, kind: input, shape index: {}]   ;;  %s3378_s2 = inlined_call_operand.hbm [shape: f32[2,3,64,64], index: 2, kind: input, shape index: {}, may-alias: {2,3}]   ;;  %s3379_s3 = inlined_call_operand.hbm [shape: f32[2,3,64,64], index: 3, kind: input, shape index: {}, may-alias: {2,3}]   ;;  %s3380_s4 = inlined_call_operand.vmem [shape: f32[2,3,66,66], index: 4, kind: output, shape index: {}]  }
   0x1   :  { %3402 = sst [smem:[#allocation29_spill]] %s3376_s0 }
   0x2   :  { %3403 = sst [smem:[#allocation30_spill]] %s3377_s1 }
   0x3   :  { %3404 = sst [smem:[#allocation31_spill]] %s3378_s2 }
   0x4   :  { %3405 = sst [smem:[#allocation32_spill]] %s3380_s4 }
   0x5   :  { %9 = vsyncpa [#allocation5], 0 }
   0x6   :  { %10 = vsyncpa [#allocation7], 0 }
   0x7   :  { %11 = vsyncpa [#allocation4], 0 }
   0x8   :  { %13 = vsyncpa [#allocation4 + $0x1], 0 }
   0x9   :  { %14 = vsyncpa [#allocation10], 0 }
   0xa   :  { %16 = vsyncpa [#allocation10 + $0x1], 0  ;;  %s2114_s15 = smov 0   ;;  %s2116_s16 = smov 0  }
   0xb   :  { %s2118_s17 = smov 0   ;;  %s2120_s18 = smov 0  }
   0xc   :  { %s2122_s19 = smov 0   ;;  %s2124_s20 = smov 0  }
   0xd   :  { %s2126_s21 = smov 0   ;;  %s2128_s22 = smov 0  }
   0xe   :  { %s2130_s23 = smov 0   ;;  %s2132_s24 = smov 0  }
   0xf   :  { %s2134_s25 = smov 0   ;;  %s2136_s26 = smov 0  }
  0x10   :  { %s2138_s27 = smov 0  }
  0x11 LB: > { %3406 = sst [smem:[#allocation16_spill]] %s2025_s22  ;;  %s1452_s28 = sadd.s32 4294967295, %s2045_s27   ;;  %s2045_s27 = sphi %s2138_s27, %s22_s27   ;;  %s2041_s26 = sphi %s2136_s26, %s3488_s26   ;;  %s2037_s25 = sphi %s2134_s25, %s3478_s25   ;;  %s2033_s24 = sphi %s2132_s24, %s3487_s24   ;;  %s2029_s23 = sphi %s2130_s23, %s3477_s23   ;;  %s2025_s22 = sphi %s2128_s22, %s3476_s22   ;;  %s2021_s21 = sphi %s2126_s21, %s3486_s21   ;;  %s2017_s20 = sphi %s2124_s20, %s3485_s20   ;;  %s2013_s19 = sphi %s2122_s19, %s3484_s19   ;;  %s2009_s18 = sphi %s2120_s18, %s3483_s18   ;;  %s2005_s17 = sphi %s2118_s17, %s3482_s17   ;;  %s2001_s16 = sphi %s2116_s16, %s3481_s16   ;;  %s1997_s15 = sphi %s2114_s15, %s3480_s15  }
  0x12   : > { %3407 = sst [smem:[#allocation17_spill]] %s2033_s24  ;;  %p102_p0 = scmp.ne.s32.totalorder %s2021_s21, %s2017_s20 }
  0x13   : > { %3408 = sst [smem:[#allocation18_spill]] %s2037_s25  ;;  %p2177_p1 = scmp.eq.s32.totalorder %s1452_s28, 0 }
  0x14   : > { %p142_p2 = scmp.ne.s32.totalorder %s2009_s18, %s2005_s17  ;;  %s157_s30 = sadd.s32 1, %s2001_s16 }
  0x15   : > { %s3409_s29 = scalar_select %p2177_p1, 1, 0 }
  0x16   : > { %p167_p3 = scmp.ne.s32.totalorder %s2001_s16, %s1997_s15  ;;  %p2187_p4 = por %p2177_p1, %p102_p0 }
  0x17   : > { %p2193_p5 = por %p142_p2, %p2177_p1  ;;  %p168_p6 = scmp.eq.s32.totalorder %s1452_s28, 3 }
  0x18   : > { %s3410_s5 = scalar_select %p2187_p4, 1, 0 }
  0x19   : > { %s3411_s6 = scalar_select %p2193_p5, 1, 0 }
  0x1a   : > { %p1468_p7 = scmp.ge.s32.totalorder %s2045_s27, 1  ;;  %p181_p8 = scmp.lt.s32.totalorder %s2045_s27, 5 }
  0x1b   : > { %p2199_p9 = por %p168_p6, %p167_p3  ;;  %s3413_s0 = sld [smem:[#allocation29_spill]] }
  0x1c   : > { %p2206_p10 = pnand %p1468_p7, %p181_p8  ;;  %s3415_s1 = sld [smem:[#allocation30_spill]] }
  0x1d   : > { %s3412_s7 = scalar_select %p2199_p9, 1, 0 }
  0x1e   : > { %s3414_s11 = scalar_select %p2206_p10, 1, 0 }
  0x1f   : > { %p1609_p11 = pneg %p2206_p10 }
  0x21   : > { %s194_s10 = sshll.u32 %s3413_s0, 4  ;;  %p2217_p12 = pnand %p1609_p11, %p2177_p1  ;;  %s195_s10 = int_to_ptr.vmem [resolvable:$true] %s194_s10 }
  0x22   : > { %s205_s14 = sshll.u32 %s3415_s1, 4  ;;  %s1804_s20 = scalar_lea.vmem %s195_s10, 64  ;;  %s206_s14 = int_to_ptr.vmem [resolvable:$true] %s205_s14 }
  0x23   : > { %p1805_p13 = scmp.ne.s32.totalorder %s195_s10, %s1804_s20  ;;  %p1806_p0 = pneg %p2217_p12 }
  0x24   : > { %p1812_p6 = scmp.lt.s32.totalorder %s195_s10, %s195_s10  ;;  %p1813_p7 = scmp.lt.s32.totalorder %s1804_s20, %s1804_s20 }
  0x25   : > { %p1807_p2 = pnand %p1806_p0, %p1805_p13 }
  0x26   : > { %p1814_p8 = por %p1813_p7, %p1812_p6 }
  0x27   : > { %p1808_p3 = pneg %p1807_p2 }
  0x29   : > { %p1815_p9 = pnand %p1814_p8, %p1808_p3 }
  0x2b   : > { %1818 = shalt.err (!%p1815_p9)
}
  0x2c   : > { %s2079_s28 = smov [#allocation3]   ;;  %s1819_s8 = scalar_lea.vmem %s206_s14, 16 }
  0x2d   : > { %1612 = dma.vmem_to_smem (!%p2217_p12), %s195_s10, 64, %s2079_s28, [#allocation5]  }
  0x2e   : > { %p1820_p11 = scmp.ne.s32.totalorder %s206_s14, %s1819_s8  ;;  %p1827_p1 = scmp.lt.s32.totalorder %s206_s14, %s206_s14 }
  0x2f   : > { %p1828_p10 = scmp.lt.s32.totalorder %s1819_s8, %s1819_s8 }
  0x30   : > { %p1822_p5 = pnand %p1820_p11, %p1806_p0 }
  0x31   : > { %p1829_p13 = por %p1828_p10, %p1827_p1 }
  0x32   : > { %p1823_p4 = pneg %p1822_p5 }
  0x34   : > { %p1830_p2 = pnand %p1829_p13, %p1823_p4 }
  0x36   : > { %1833 = shalt.err (!%p1830_p2)
}
  0x37   : > { %s2080_s9 = smov [#allocation6]   ;;  %s31_s10 = sadd.s32 1, %s2037_s25 }
  0x38   : > { %1615 = dma.vmem_to_smem (!%p2217_p12), %s206_s14, 16, %s2080_s9, [#allocation7]  }
  0x39   : > { %s34_s12 = sadd.s32 1, %s2041_s26  ;;  %p32_p1 = scmp.ge.s32.totalorder %s31_s10, 2 }
  0x3a   : > { %s89_s13 = sadd.s32 1, %s2025_s22  ;;  %p96_p4 = scmp.ne.s32.totalorder %s2025_s22, %s2021_s21 }
  0x3b   : > { %s3490_s10 = smov (%p32_p1, %s31_s10), 0  ;;  %s3492_s12 = smov (!%p32_p1, %s34_s12), %s2041_s26 }
  0x3c   : > { %3417 = sst [smem:[#allocation19_spill]] %s3490_s10  ;;  %p36_p5 = scmp.ge.s32.totalorder %s3492_s12, 2 }
  0x3d   : > { %p97_p9 = scmp.eq.s32.totalorder %s2045_s27, 0  ;;  %s153_s17 = ssub.s32 %s2037_s25, %s3490_s10 }
  0x3e   : > { %s3494_s12 = smov (%p36_p5, %s3492_s12), 0  ;;  %p3387_p3 = scmp.lt.s32.totalorder %s2045_s27, 4 }
  0x3f   : > { %3418 = sst [smem:[#allocation20_spill]] %s3494_s12  ;;  %s2242_s14 = ssub.s32 %s2041_s26, %s3494_s12 }
  0x40   : > { %p98_p10 = por %p97_p9, %p96_p4  ;;  %s154_s20 = sor.u32 %s153_s17, %s2242_s14 }
  0x41   : > { %p155_p12 = scmp.eq.s32.totalorder %s154_s20, 0  ;;  %p87_p0 = scmp.eq.s32.totalorder %s2242_s14, 0 }
  0x42   : > { %s216_s9 = sand.u32 1, %s2025_s22   ;;  %p2261_p6 = pnand %p3387_p3, %p98_p10 }
  0x43   : > { %s2252_s28 = scalar_select %p155_p12, %s2001_s16, %s157_s30  }
  0x44   : > { %s2255_s8 = scalar_select %p87_p0, %s2025_s22, %s89_s13  }
  0x45   : > { %3419 = sst [smem:[#allocation21_spill]] %s2252_s28  ;;  %s1589_s0 = smul.u32 192, %s216_s9 }
  0x46   : > { %3420 = sst [smem:[#allocation22_spill]] %s2255_s8  ;;  %s1994_s20 = smul.u32 3072, %s2041_s26 }
  0x47   : > { %s220_s4 = scalar_lea.vmem [#allocation8], %s1589_s0  ;;  %s3422_s2 = sld [smem:[#allocation31_spill]] }
  0x48   : > { %s231_s17 = sshll.u32 %s220_s4, 4  ;;  %s2273_s1 = scalar_lea.sflag [#allocation4], %s216_s9  ;;  %s2266_s17 = int_to_ptr.vmem [resolvable:$true] %s231_s17 }
  0x49   : > { %p1836_p8 = pneg %p2261_p6 }
  0x4d   : > { %s2271_s13 = scalar_lea.hbm %s3422_s2, %s1994_s20  ;;  %s1839_s24 = scalar_lea.hbm %s3422_s2, 6144 }
  0x4e   : > { %s1834_s8 = scalar_lea.hbm %s2271_s13, 3072  ;;  %p1840_p2 = scmp.lt.u32.totalorder %s2271_s13, %s3422_s2 }
  0x4f   : > { %p1835_p7 = scmp.ne.s32.totalorder %s2271_s13, %s1834_s8  ;;  %p1841_p1 = scmp.lt.u32.totalorder %s1839_s24, %s1834_s8 }
  0x50   : > { %p1843_p5 = scmp.lt.u32.totalorder %s1834_s8, %s2271_s13 }
  0x51   : > { %p1837_p11 = pnand %p1836_p8, %p1835_p7  ;;  %p1842_p4 = por %p1841_p1, %p1840_p2 }
  0x53   : > { %p1838_p13 = pneg %p1837_p11  ;;  %p1844_p10 = por %p1843_p5, %p1842_p4 }
  0x55   : > { %p1845_p12 = pnand %p1844_p10, %p1838_p13 }
  0x57   : > { %1848 = shalt.err (!%p1845_p12)
}
  0x58   : > { %s1849_s9 = scalar_lea.vmem %s2266_s17, 3072  ;;  %s2081_s0 = smov [#allocation8]  }
  0x59   : > { %p1850_p0 = scmp.ne.s32.totalorder %s2266_s17, %s1849_s9  ;;  %s1854_s4 = sshll.u32 %s2081_s0, 4  ;;  %s1855_s4 = int_to_ptr.vmem [resolvable:$false] %s1854_s4 }
  0x5a   : > { %s1856_s20 = scalar_lea.vmem %s1855_s4, 6144  ;;  %p1857_p3 = scmp.lt.s32.totalorder %s2266_s17, %s1855_s4 }
  0x5b   : > { %p1852_p7 = pnand %p1850_p0, %p1836_p8  ;;  %p1858_p2 = scmp.lt.s32.totalorder %s1856_s20, %s1849_s9 }
  0x5d   : > { %p1853_p11 = pneg %p1852_p7  ;;  %p1859_p1 = por %p1858_p2, %p1857_p3 }
  0x5f   : > { %p1860_p4 = pnand %p1859_p1, %p1853_p11 }
  0x61   : > { %1863 = shalt.err (!%p1860_p4)
}
  0x62   : > { %s3388_s8 = smov 128   ;;  %s3389_s24 = smov 8  }
  0x63   : > { %1619 = dma.hbm_to_vmem [thread:$0]  (!%p2261_p6), %s2271_s13, 3072, %s2266_s17, %s2273_s1, %s3388_s8, %s3388_s8, %s3389_s24  }
  0x64   : > { %s1454_s30 = sshll.u32 %s2037_s25, 3  ;;  %s1461_s0 = sshll.u32 %s3490_s10, 3 }
  0x65   : > { %s1455_s9 = sadd.s32 4294967295, %s1454_s30  ;;  %s1462_s4 = sadd.s32 4294967295, %s1461_s0 }
  0x66   : > { %p114_p3 = scmp.gt.s32.totalorder %s1455_s9, 0  ;;  %p1456_p8 = scmp.lt.s32.totalorder %s1455_s9, 7 }
  0x67   : > { %s129_s20 = sadd.s32 1, %s2013_s19  ;;  %p120_p13 = scmp.gt.s32.totalorder %s1462_s4, 0 }
  0x68   : > { %s3496_s9 = smov (!%p114_p3, %s1455_s9), 0  ;;  %p1463_p5 = scmp.lt.s32.totalorder %s1462_s4, 7 }
  0x69   : > { %s3498_s9 = smov (!%p1456_p8, %s3496_s9), 7  ;;  %s3500_s4 = smov (!%p120_p13, %s1462_s4), 0 }
  0x6a   : > { %p136_p10 = scmp.ne.s32.totalorder %s2013_s19, %s2009_s18  ;;  %s241_s12 = sand.u32 1, %s2013_s19  }
  0x6b   : > { %s3502_s4 = smov (!%p1463_p5, %s3500_s4), 7  ;;  %s1591_s17 = smul.u32 24, %s241_s12 }
  0x6c   : > { %p138_p6 = por %p136_p10, %p97_p9  ;;  %s125_s1 = ssub.s32 %s3498_s9, %s3502_s4 }
  0x6d   : > { %s126_s13 = sor.u32 %s125_s1, %s2242_s14  ;;  %s3423_s30 = smul.u32 24, %s2041_s26 }
  0x6e   : > { %p127_p12 = scmp.eq.s32.totalorder %s126_s13, 0  ;;  %s245_s24 = scalar_lea.vmem [#allocation9], %s1591_s17 }
  0x6f   : > { %s256_s8 = sadd.s32 %s3423_s30, %s3498_s9  ;;  %s259_s2 = sshll.u32 %s245_s24, 4  ;;  %s2323_s2 = int_to_ptr.vmem [resolvable:$true] %s259_s2 }
  0x70   : > { %s1481_s0 = sshll.u32 %s256_s8, 7  ;;  %p3424_p9 = scmp.lt.s32.totalorder %s2045_s27, 4 }
  0x71   : > { %s2316_s10 = scalar_select %p127_p12, %s2013_s19, %s129_s20  }
  0x72   : > { %s2321_s28 = scalar_lea.hbm %s3379_s3, %s1481_s0  ;;  %p2327_p0 = pnand %p3424_p9, %p138_p6 }
  0x73   : > { %s2331_s8 = scalar_lea.sflag [#allocation10], %s241_s12  ;;  %s1864_s24 = scalar_lea.hbm %s2321_s28, 384 }
  0x74   : > { %p1865_p7 = scmp.ne.s32.totalorder %s2321_s28, %s1864_s24  ;;  %p1866_p11 = pneg %p2327_p0 }
  0x75   : > { %s1869_s9 = scalar_lea.hbm %s3379_s3, 6144  ;;  %p1870_p4 = scmp.lt.u32.totalorder %s2321_s28, %s3379_s3 }
  0x76   : > { %p1867_p2 = pnand %p1866_p11, %p1865_p7  ;;  %p1871_p3 = scmp.lt.u32.totalorder %s1869_s9, %s1864_s24 }
  0x77   : > { %p1873_p13 = scmp.lt.u32.totalorder %s1864_s24, %s2321_s28 }
  0x78   : > { %p1868_p1 = pneg %p1867_p2  ;;  %p1872_p8 = por %p1871_p3, %p1870_p4 }
  0x7a   : > { %p1874_p5 = por %p1873_p13, %p1872_p8 }
  0x7c   : > { %p1875_p10 = pnand %p1874_p5, %p1868_p1 }
  0x7e   : > { %1878 = shalt.err (!%p1875_p10)
}
  0x7f   : > { %s1879_s12 = scalar_lea.vmem %s2323_s2, 384  ;;  %s2084_s1 = smov [#allocation9]  }
  0x80   : > { %p1880_p6 = scmp.ne.s32.totalorder %s2323_s2, %s1879_s12  ;;  %s1884_s17 = sshll.u32 %s2084_s1, 4  ;;  %s1885_s17 = int_to_ptr.vmem [resolvable:$false] %s1884_s17 }
  0x81   : > { %s1886_s13 = scalar_lea.vmem %s1885_s17, 768  ;;  %p1887_p7 = scmp.lt.s32.totalorder %s2323_s2, %s1885_s17 }
  0x82   : > { %p1882_p12 = pnand %p1880_p6, %p1866_p11  ;;  %p1888_p2 = scmp.lt.s32.totalorder %s1886_s13, %s1879_s12 }
  0x84   : > { %p1883_p9 = pneg %p1882_p12  ;;  %p1889_p4 = por %p1888_p2, %p1887_p7 }
  0x86   : > { %p1890_p3 = pnand %p1889_p4, %p1883_p9 }
  0x88   : > { %1893 = shalt.err (!%p1890_p3)
}
  0x89   : > { %s2085_s30 = smov 1024   ;;  %s3426_s0 = smov 8  }
  0x8a   : > { %s3427_s24 = smov 128   ;;  %p3428_p11 = scmp.ne.s32.totalorder %s3414_s11, 0 }
  0x8b   : > { %1622 = dma.hbm_to_vmem [thread:$0]  (!%p2327_p0), %s2321_s28, 384, %s2323_s2, %s2331_s8, %s2085_s30, %s3427_s24, %s3426_s0  }
  0x8c   : > { %271 = sbr.rel (%p3428_p11) target bundleno = 465 (0x1d1), region = 36 }
  0x93   : > { %p3429_p1 = scmp.ne.s32.totalorder %s3409_s29, 0 }
  0x95   : > { %1979 = dma.done.wait (%p3429_p1), [#allocation5], 64  }
  0x96   : > { %1981 = vsyncadd (%p3429_p1), [#allocation5], 4294967232 }
  0x97   : > { %1983 = dma.done.wait (%p3429_p1), [#allocation7], 16  }
  0x98   : > { %1985 = vsyncadd (%p3429_p1), [#allocation7], 4294967280  ;;  %s281_s14 = sand.u32 1, %s2021_s21   ;;  %p3430_p0 = scmp.ne.s32.totalorder %s3410_s5, 0 }
  0x99   : > { %s1593_s22 = smul.u32 192, %s281_s14  ;;  %s282_s2 = scalar_lea.sflag [#allocation4], %s281_s14 }
  0x9b   : > { %s2372_s28 = scalar_lea.vmem [#allocation8], %s1593_s22 }
  0x9c   : > { %1987 = dma.done.wait (%p3430_p0), %s282_s2, 3072  }
  0x9d   : > { %1989 = vsyncadd (%p3430_p0), %s282_s2, 4294964224  ;;  %s290_s11 = sand.u32 1, %s2009_s18   ;;  %p3431_p8 = scmp.ne.s32.totalorder %s3411_s6, 0 }
  0x9e   : > { %s1594_s8 = smul.u32 24, %s290_s11  ;;  %s291_s25 = scalar_lea.sflag [#allocation10], %s290_s11 }
  0xa0   : > { %s2379_s9 = scalar_lea.vmem [#allocation9], %s1594_s8 }
  0xa1   : > { %1991 = dma.done.wait (%p3431_p8), %s291_s25, 384  }
  0xa2   : > { %1993 = vsyncadd (%p3431_p8), %s291_s25, 4294966912 }
  0xa3   : > { %299 = sfence }
  0xa4   : > { %v3393_v0 = vlaneseq  ;;  %s2385_s29 = sld [smem:[#allocation6]]  ;;  %s1486_s4 = sld [smem:[#allocation3 + $0x1]]  ;;  %v2399_v4 = vld [vmem:[%s2372_s28 + $0x8] sm:$0xff]  ;;  %v2402_v5 = vld [vmem:[%s2372_s28 + $0x10] sm:$0xff]  ;;  %v2479_v33 = vld [vmem:[%s2372_s28] sm:$0xff]  ;;  %vm565_vm3 = vcmask 523264  }
  0xa5   : > { %s382_s5 = sld [smem:[#allocation3]]  ;;  %s1485_s20 = sshll.u32 %s2029_s23, 6  ;;  %v2409_v6 = vld [vmem:[%s2372_s28 + $0x48] sm:$0xff]  ;;  %v2412_v7 = vld [vmem:[%s2372_s28 + $0x50] sm:$0xff]  ;;  %v2489_v36 = vld [vmem:[%s2372_s28 + $0x40] sm:$0xff] }
  0xa6   : > { %v2388_v1 = vshrl.u32 %v3393_v0, 7  ;;  %s1496_s6 = sld [smem:[#allocation3 + $0x2]]  ;;  %s2392_s12 = sld [smem:[#allocation6 + $0x1]]  ;;  %v2396_v3 = vstv %s1485_s20  ;;  %v2415_v8 = vld [vmem:[%s2372_s28 + $0x88] sm:$0xff]  ;;  %v2426_v12 = vld [vmem:[%s2372_s28 + $0x90] sm:$0xff]  ;;  %v2505_v43 = vld [vmem:[%s2372_s28 + $0x80] sm:$0xff] }
  0xa7   : > { %s2394_s1 = sld [smem:[#allocation3 + $0x80]]  ;;  %s2404_s17 = sld [smem:[#allocation3 + $0x81]]  ;;  %v2524_v55 = vld [vmem:[%s2372_s28 + $0x18] sm:$0xff]  ;;  %v2736_v0 = vld [vmem:[%s2372_s28 + $0xb0] sm:$0xff] }
  0xa8   : > { %v341_v2 = vadd.s32 16, %v2388_v1  ;;  %s2406_s13 = sld [smem:[#allocation3 + $0x82]]  ;;  %vm490_vm0 = vcmp.lt.s32.totalorder %v2388_v1, 1  ;;  %s2086_s0 = smov 0.0   ;;  %v340_v16 = vadd.s32 8, %v2388_v1  ;;  %v2448_v20 = vadd.s32 24, %v2388_v1 }
  0xa9   : > { %s2087_s14 = smov 6.0   ;;  %s2450_s2 = sld [smem:[#allocation6 + $0x2]]  ;;  %v2492_v37 = vadd.s32 32, %v2388_v1  ;;  %v2495_v38 = vadd.s32 40, %v2388_v1 }
  0xaa   : > { %s551_s30 = sadd.f32 3.0, %s2385_s29  ;;  %v2421_v10 = vstv %s2385_s29  ;;  %v2423_v11 = vstv %s1486_s4  ;;  %v2430_v13 = vadd.s32 %v2396_v3, %v341_v2  ;;  %v2532_v58 = vadd.s32 %v2396_v3, %v340_v16  ;;  %v2543_v2 = vld [vmem:[%s2372_s28 + $0x58] sm:$0xff]  ;;  %p3465_p13 = scmp.ne.s32.totalorder %s3412_s7, 0 }
  0xab   : > { %v2418_v9 = vstv %s382_s5  ;;  %v424_v17 = vmul.f32 %v2409_v6, %v2423_v11  ;;  %v425_v18 = vmul.f32 %v2412_v7, %v2423_v11  ;;  %v423_v50 = vmul.f32 %v2489_v36, %v2423_v11 }
  0xac   : > { %v393_v14 = vmul.f32 %v2418_v9, %v2399_v4  ;;  %v394_v15 = vmul.f32 %v2418_v9, %v2402_v5  ;;  %s552_s24 = smax.f32 %s2086_s0, %s551_s30  ;;  %v2442_v19 = vstv %s1496_s6  ;;  %s777_s11 = sadd.f32 3.0, %s2392_s12  ;;  %v2463_v26 = vstv %s2392_s12 }
  0xad   : > { %s2445_s22 = smin.f32 %s2087_s14, %s552_s24  ;;  %v455_v23 = vmul.f32 %v2415_v8, %v2442_v19  ;;  %v456_v24 = vmul.f32 %v2426_v12, %v2442_v19  ;;  %v2460_v25 = vstv %s2394_s1  ;;  %v2466_v27 = vstv %s2404_s17  ;;  %s2088_s17 = smov 1  }
  0xae   : > { %v402_v21 = vadd.f32 %v2421_v10, %v393_v14  ;;  %v403_v22 = vadd.f32 %v2421_v10, %v394_v15  ;;  %v2469_v28 = vstv %s2406_s13  ;;  %s554_s8 = smul.f32 %s2445_s22, %s2385_s29  ;;  %v632_v31 = vmul.f32 %v2460_v25, %v2399_v4  ;;  %s778_s25 = smax.f32 %s2086_s0, %s777_s11 }
  0xaf   : > { %v633_v32 = vmul.f32 %v2460_v25, %v2402_v5  ;;  %v662_v34 = vmul.f32 %v2409_v6, %v2466_v27  ;;  %v663_v35 = vmul.f32 %v2412_v7, %v2466_v27  ;;  %s2486_s29 = smin.f32 %s2087_s14, %s778_s25  ;;  %v691_v42 = vmul.f32 %v2415_v8, %v2469_v28  ;;  %s997_s4 = sadd.f32 3.0, %s2450_s2 }
  0xb0   : > { %v432_v29 = vadd.f32 %v424_v17, %v402_v21  ;;  %v433_v30 = vadd.f32 %v425_v18, %v403_v22  ;;  %v641_v41 = vadd.f32 %v2463_v26, %v632_v31  ;;  %s780_s5 = smul.f32 %s2392_s12, %s2486_s29  ;;  %vm359_vm1 = vcmp.eq.s32.totalorder %v2430_v13, 0  ;;  %s2863_s13 = sld [smem:[#allocation3 + $0x101]] }
  0xb1   : > { %vm367_vm2 = vcmp.ge.s32.totalorder %v2430_v13, 65  ;;  %v642_v44 = vadd.f32 %v2463_v26, %v633_v32  ;;  %v692_v45 = vmul.f32 %v2426_v12, %v2469_v28  ;;  %v392_v46 = vmul.f32 %v2418_v9, %v2479_v33  ;;  %s555_s20 = smul.f32 0.16666667, %s554_s8  ;;  %s998_s6 = smax.f32 %s2086_s0, %s997_s4 }
  0xb2   : > { %v463_v39 = vadd.f32 %v455_v23, %v432_v29  ;;  %v2497_v40 = vadd.f32 %v456_v24, %v433_v30  ;;  %v670_v49 = vadd.f32 %v662_v34, %v641_v41  ;;  %v454_v53 = vmul.f32 %v2505_v43, %v2442_v19  ;;  %s781_s12 = smul.f32 0.16666667, %s780_s5  ;;  %s2537_s1 = smin.f32 %s2087_s14, %s998_s6  ;;  %v2555_v24 = vld [vmem:[%s2372_s28 + $0x98] sm:$0xff]  ;;  %vm2590_vm6 = vmor %vm359_vm1, %vm367_vm2 }
  0xb3   : > { %v671_v51 = vadd.f32 %v663_v35, %v642_v44  ;;  %v401_v52 = vadd.f32 %v2421_v10, %v392_v46  ;;  %v631_v54 = vmul.f32 %v2460_v25, %v2479_v33  ;;  %v661_v59 = vmul.f32 %v2489_v36, %v2466_v27  ;;  %s2865_s30 = sld [smem:[#allocation3 + $0x102]]  ;;  %s1000_s0 = smul.f32 %s2450_s2, %s2537_s1 }
  0xb4   : > { %v483_v47 = vrot.slane %v463_v39, 7  ;;  %v484_v48 = vrot.slane %v2497_v40, 7  ;;  %v699_v57 = vadd.f32 %v691_v42, %v670_v49  ;;  %v2545_v14 = vstv %s555_s20  ;;  %s3467_s20 = sld [smem:[#allocation32_spill]] (%p3465_p13) }
  0xb5   : > { %v2539_v61 = vadd.f32 %v692_v45, %v671_v51  ;;  %v431_v62 = vadd.f32 %v423_v50, %v401_v52  ;;  %v640_v63 = vadd.f32 %v2463_v26, %v631_v54  ;;  %v690_v16 = vmul.f32 %v2505_v43, %v2469_v28  ;;  %s1001_s24 = smul.f32 0.16666667, %s1000_s0 }
  0xb6   : > { %v496_v56 = vsel %vm490_vm0, %v483_v47, %v484_v48  ;;  %v710_v15 = vrot.slane %v699_v57, 7  ;;  %v395_v17 = vmul.f32 %v2418_v9, %v2524_v55  ;;  %v2557_v29 = vstv %s781_s12 }
  0xb7   : > { %v513_v60 = vadd.f32 3.0, %v496_v56  ;;  %v711_v21 = vrot.slane %v2539_v61, 7  ;;  %v2552_v22 = vadd.f32 %v454_v53, %v431_v62  ;;  %v669_v23 = vadd.f32 %v661_v59, %v640_v63 }
  0xb8   : > { %vm358_vm4 = vcmp.eq.s32.totalorder %v2532_v58, 0  ;;  %vm366_vm5 = vcmp.ge.s32.totalorder %v2532_v58, 65  ;;  %v2563_v30 = vadd.s32 %v2396_v3, %v2448_v20  ;;  %v404_v31 = vadd.f32 %v2421_v10, %v395_v17  ;;  %v2606_v17 = vld [vmem:[%s2372_s28 + $0x20] sm:$0xff] }
  0xb9   : > { %v521_v18 = vmax.f32 %v513_v60, 0.0  ;;  %v426_v32 = vmul.f32 %v2543_v2, %v2423_v11  ;;  %v722_v35 = vsel %vm490_vm0, %v710_v15, %v711_v21  ;;  %v3395_v39 = vrot.slane %v2552_v22, 7  ;;  %vm2641_vm9 = vmor %vm358_vm4, %vm366_vm5 }
  0xba   : > { %v2573_v41 = vadd.f32 %v690_v16, %v669_v23  ;;  %v739_v42 = vadd.f32 3.0, %v722_v35  ;;  %v457_v20 = vmul.f32 %v2555_v24, %v2442_v19  ;;  %v634_v45 = vmul.f32 %v2460_v25, %v2524_v55 }
  0xbb   : > { %v529_v34 = vmin.f32 %v521_v18, 6.0  ;;  %v434_v44 = vadd.f32 %v426_v32, %v404_v31  ;;  %v497_v49 = vsel %vm490_vm0, %v3395_v39, %v483_v47  ;;  %v664_v51 = vmul.f32 %v2543_v2, %v2466_v27  ;;  %v2609_v18 = vld [vmem:[%s2372_s28 + $0x60] sm:$0xff] }
  0xbc   : > { %v3394_v50 = vrot.slane %v2573_v41, 7  ;;  %v3432_v52 = vmov 0  ;;  %v747_v53 = vmax.f32 %v739_v42, 0.0  ;;  %v512_v54 = vadd.f32 3.0, %v497_v49  ;;  %v2620_v32 = vld [vmem:[%s2372_s28 + $0xa0] sm:$0xff] }
  0xbd   : > { %v537_v46 = vmul.f32 %v529_v34, %v496_v56  ;;  %v3433_v52 = vsel %vm2590_vm6, 4294967295, %v3432_v52  ;;  %v2594_v56 = vadd.f32 %v457_v20, %v434_v44  ;;  %v643_v47 = vadd.f32 %v2463_v26, %v634_v45 }
  0xbe   : > { %3434 = vst [vmem:[#allocation23_spill] sm:$0xff] %v3433_v52  ;;  %v723_v59 = vsel %vm490_vm0, %v3394_v50, %v710_v15  ;;  %vm360_vm7 = vcmp.eq.s32.totalorder %v2563_v30, 0  ;;  %v693_v13 = vmul.f32 %v2555_v24, %v2469_v28  ;;  %v755_v60 = vmin.f32 %v747_v53, 6.0 }
  0xbf   : > { %v545_v57 = vmul.f32 0.16666667, %v537_v46  ;;  %v520_v62 = vmax.f32 %v512_v54, 0.0  ;;  %v738_v63 = vadd.f32 3.0, %v723_v59  ;;  %v485_v16 = vrot.slane %v2594_v56, 7 }
  0xc0   : > { %vm368_vm8 = vcmp.ge.s32.totalorder %v2563_v30, 65  ;;  %v672_v15 = vadd.f32 %v664_v51, %v643_v47  ;;  %v2617_v31 = vadd.s32 %v2396_v3, %v2492_v37  ;;  %v763_v34 = vmul.f32 %v755_v60, %v722_v35 }
  0xc1   : > { %v559_v23 = vsel %vm2590_vm6, %v2545_v14, %v545_v57  ;;  %v528_v42 = vmin.f32 %v520_v62, 6.0  ;;  %v746_v44 = vmax.f32 %v738_v63, 0.0  ;;  %v495_v20 = vsel %vm490_vm0, %v484_v48, %v485_v16  ;;  %vm2684_vm10 = vmor %vm360_vm7, %vm368_vm8 }
  0xc2   : > { %568 = vst.msk [vmem:[#allocation2 + $0x10] sm:$0xff] %vm565_vm3, %v559_v23  ;;  %v514_v45 = vadd.f32 3.0, %v495_v20  ;;  %v2629_v46 = vadd.f32 %v693_v13, %v672_v15  ;;  %v396_v37 = vmul.f32 %v2418_v9, %v2606_v17  ;;  %v427_v51 = vmul.f32 %v2609_v18, %v2423_v11 }
  0xc3   : > { %v771_v53 = vmul.f32 0.16666667, %v763_v34  ;;  %v536_v35 = vmul.f32 %v528_v42, %v497_v49  ;;  %v754_v54 = vmin.f32 %v746_v44, 6.0  ;;  %v458_v40 = vmul.f32 %v2620_v32, %v2442_v19  ;;  %v2660_v44 = vld [vmem:[%s2372_s28 + $0x28] sm:$0xff] }
  0xc4   : > { %v3435_v48 = vmov 0  ;;  %v522_v47 = vmax.f32 %v514_v45, 0.0  ;;  %v712_v57 = vrot.slane %v2629_v46, 7  ;;  %v405_v13 = vadd.f32 %v2421_v10, %v396_v37  ;;  %v2663_v45 = vld [vmem:[%s2372_s28 + $0x68] sm:$0xff] }
  0xc5   : > { %v3436_v48 = vsel %vm2641_vm9, 4294967295, %v3435_v48  ;;  %v635_v49 = vmul.f32 %v2460_v25, %v2606_v17  ;;  %v785_v60 = vsel %vm2590_vm6, %v2557_v29, %v771_v53  ;;  %v544_v62 = vmul.f32 0.16666667, %v536_v35 }
  0xc6   : > { %3437 = vst [vmem:[#allocation24_spill] sm:$0xff] %v3436_v48  ;;  %v762_v63 = vmul.f32 %v754_v54, %v723_v59  ;;  %v665_v58 = vmul.f32 %v2609_v18, %v2466_v27  ;;  %v530_v23 = vmin.f32 %v522_v47, 6.0  ;;  %v721_v15 = vsel %vm490_vm0, %v711_v21, %v712_v57  ;;  %v2672_v54 = vld [vmem:[%s2372_s28 + $0xa8] sm:$0xff] }
  0xc7   : > { %v435_v34 = vadd.f32 %v427_v51, %v405_v13  ;;  %v644_v42 = vadd.f32 %v2463_v26, %v635_v49  ;;  %v558_v59 = vsel %vm2641_vm9, %v2545_v14, %v544_v62  ;;  %v740_v37 = vadd.f32 3.0, %v721_v15 }
  0xc8   : > { %v770_v46 = vmul.f32 0.16666667, %v762_v63  ;;  %v694_v53 = vmul.f32 %v2620_v32, %v2469_v28  ;;  %567 = vst.msk [vmem:[#allocation2 + $0x8] sm:$0xff] %vm565_vm3, %v558_v59  ;;  %v538_v21 = vmul.f32 %v530_v23, %v495_v20  ;;  %v2676_v47 = vadd.s32 %v2396_v3, %v2388_v1 }
  0xc9   : > { %v576_v61 = vld [vmem:[#allocation2 + $0x10] sm:$0xff]  ;;  %v466_v51 = vadd.f32 %v458_v40, %v435_v34  ;;  %v673_v35 = vadd.f32 %v665_v58, %v644_v42  ;;  %v3438_v13 = vmov 0  ;;  %v748_v20 = vmax.f32 %v740_v37, 0.0 }
  0xca   : > { %586 = vrot.lane.b32.xlu1 %v576_v61, %s2088_s17  ;;  %793 = vst.msk [vmem:[#allocation2 + $0x10] sm:$0xff] %vm565_vm3, %v785_v60  ;;  %v3439_v13 = vsel %vm2684_vm10, 4294967295, %v3438_v13  ;;  %vm361_vm11 = vcmp.eq.s32.totalorder %v2617_v31, 0  ;;  %vm369_vm12 = vcmp.ge.s32.totalorder %v2617_v31, 65  ;;  %v397_v40 = vmul.f32 %v2418_v9, %v2660_v44 }
  0xcb   : > { %3440 = vst [vmem:[#allocation25_spill] sm:$0xff] %v3439_v13  ;;  %v428_v49 = vmul.f32 %v2663_v45, %v2423_v11  ;;  %v546_v60 = vmul.f32 0.16666667, %v538_v21  ;;  %v486_v62 = vrot.slane %v466_v51, 7  ;;  %v702_v63 = vadd.f32 %v694_v53, %v673_v35  ;;  %v2717_v35 = vld [vmem:[%s2372_s28 + $0x30] sm:$0xff]  ;;  %vm2754_vm15 = vmor %vm361_vm11, %vm369_vm12 }
  0xcc   : > { %v2696_v30 = vadd.s32 %v2396_v3, %v2495_v38  ;;  %v784_v58 = vsel %vm2641_vm9, %v2557_v29, %v770_v46  ;;  %v756_v23 = vmin.f32 %v748_v20, 6.0  ;;  %v406_v34 = vadd.f32 %v2421_v10, %v397_v40  ;;  %v2720_v20 = vld [vmem:[%s2372_s28 + $0x70] sm:$0xff] }
  0xcd   : > { %v459_v42 = vmul.f32 %v2672_v54, %v2442_v19  ;;  %v560_v59 = vsel %vm2684_vm10, %v2545_v14, %v546_v60  ;;  %v494_v38 = vsel %vm490_vm0, %v485_v16, %v486_v62  ;;  %v713_v37 = vrot.slane %v702_v63, 7 }
  0xce   : > { %v636_v53 = vmul.f32 %v2460_v25, %v2660_v44  ;;  %569 = vst.msk [vmem:[#allocation2 + $0x18] sm:$0xff] %vm565_vm3, %v560_v59  ;;  %v764_v46 = vmul.f32 %v756_v23, %v721_v15  ;;  %v515_v61 = vadd.f32 3.0, %v494_v38  ;;  %v436_v21 = vadd.f32 %v428_v49, %v406_v34 }
  0xcf   : > { %v666_v51 = vmul.f32 %v2663_v45, %v2466_v27  ;;  %v720_v56 = vsel %vm490_vm0, %v712_v57, %v713_v37  ;;  %v695_v40 = vmul.f32 %v2672_v54, %v2469_v28  ;;  %v345_v15 = vadd.s32 48, %v2388_v1  ;;  %v575_v60 = vld [vmem:[#allocation2 + $0x8] sm:$0xff] }
  0xd0   : > { %v645_v16 = vadd.f32 %v2463_v26, %v636_v53  ;;  %v772_v49 = vmul.f32 0.16666667, %v764_v46  ;;  %v523_v63 = vmax.f32 %v515_v61, 0.0  ;;  %v741_v23 = vadd.f32 3.0, %v720_v56  ;;  %584 = vrot.lane.b32.xlu0 %v575_v60, %s2088_s17  ;;  %792 = vst.msk [vmem:[#allocation2 + $0x8] sm:$0xff] %vm565_vm3, %v784_v58 }
  0xd1   : > { %v467_v34 = vadd.f32 %v459_v42, %v436_v21  ;;  %vm362_vm13 = vcmp.eq.s32.totalorder %v2696_v30, 0  ;;  %v398_v57 = vmul.f32 %v2418_v9, %v2717_v35  ;;  %v429_v53 = vmul.f32 %v2720_v20, %v2423_v11 }
  0xd2   : > { %v674_v59 = vadd.f32 %v666_v51, %v645_v16  ;;  %v531_v50 = vmin.f32 %v523_v63, 6.0  ;;  %v749_v46 = vmax.f32 %v741_v23, 0.0  ;;  %vm370_vm14 = vcmp.ge.s32.totalorder %v2696_v30, 65 }
  0xd3   : > { %v487_v42 = vrot.slane %v467_v34, 7  ;;  %v786_v58 = vsel %vm2684_vm10, %v2557_v29, %v772_v49  ;;  %v2743_v21 = vadd.s32 %v2396_v3, %v345_v15  ;;  %v407_v51 = vadd.f32 %v2421_v10, %v398_v57  ;;  %vm2801_vm4 = vmor %vm362_vm13, %vm370_vm14 }
  0xd4   : > { %v703_v61 = vadd.f32 %v695_v40, %v674_v59  ;;  %v539_v16 = vmul.f32 %v531_v50, %v494_v38  ;;  %v757_v60 = vmin.f32 %v749_v46, 6.0  ;;  %v460_v23 = vmul.f32 %v2736_v0, %v2442_v19  ;;  %v2767_v46 = vld [vmem:[%s2372_s28 + $0x38] sm:$0xff] }
  0xd5   : > { %v493_v63 = vsel %vm490_vm0, %v486_v62, %v487_v42  ;;  %v577_v34 = vld [vmem:[#allocation2 + $0x18] sm:$0xff]  ;;  %v3441_v40 = vmov 0  ;;  %v437_v38 = vadd.f32 %v429_v53, %v407_v51  ;;  %v637_v49 = vmul.f32 %v2460_v25, %v2717_v35  ;;  %3444 = vst [vmem:[#allocation27_spill] sm:$0xff] %v2767_v46 }
  0xd6   : > { %v3442_v40 = vsel %vm2754_vm15, 4294967295, %v3441_v40  ;;  %v516_v15 = vadd.f32 3.0, %v493_v63  ;;  %v714_v50 = vrot.slane %v703_v61, 7  ;;  %794 = vst.msk [vmem:[#allocation2 + $0x18] sm:$0xff] %vm565_vm3, %v786_v58  ;;  %588 = vrot.lane.b32.xlu1 %v577_v34, %s2088_s17  ;;  %v547_v62 = vmul.f32 0.16666667, %v539_v16 }
  0xd7   : > { %3443 = vst [vmem:[#allocation26_spill] sm:$0xff] %v3442_v40  ;;  %v765_v59 = vmul.f32 %v757_v60, %v720_v56  ;;  %v667_v31 = vmul.f32 %v2720_v20, %v2466_v27  ;;  %v696_v57 = vmul.f32 %v2736_v0, %v2469_v28  ;;  %v468_v61 = vadd.f32 %v460_v23, %v437_v38  ;;  %v2773_v51 = vld [vmem:[%s2372_s28 + $0x78] sm:$0xff] }
  0xd8   : > { %v524_v39 = vmax.f32 %v516_v15, 0.0  ;;  %v719_v53 = vsel %vm490_vm0, %v713_v37, %v714_v50  ;;  %v646_v58 = vadd.f32 %v2463_v26, %v637_v49  ;;  %3445 = vst [vmem:[#allocation28_spill] sm:$0xff] %v2773_v51  ;;  %v561_v56 = vsel %vm2754_vm15, %v2545_v14, %v547_v62  ;;  %v2787_v49 = vld [vmem:[%s2372_s28 + $0xb8] sm:$0xff]  ;;  %s2834_s28 = sld [smem:[#allocation3 + $0x100]] }
  0xd9   : > { %v773_v16 = vmul.f32 0.16666667, %v765_v59  ;;  %v742_v60 = vadd.f32 3.0, %v719_v53  ;;  %v346_v34 = vadd.s32 56, %v2388_v1  ;;  %570 = vst.msk [vmem:[#allocation2 + $0x20] sm:$0xff] %vm565_vm3, %v561_v56  ;;  %v488_v13 = vrot.slane %v468_v61, 7 }
  0xda   : > { %v532_v15 = vmin.f32 %v524_v39, 6.0  ;;  %v675_v48 = vadd.f32 %v667_v31, %v646_v58  ;;  %v399_v37 = vmul.f32 %v2418_v9, %v2767_v46  ;;  %vm363_vm1 = vcmp.eq.s32.totalorder %v2743_v21, 0  ;;  %v409_v40 = vld [vmem:[%s2379_s9 + $0x7] sm:$0x1] }
  0xdb   : > { %v750_v23 = vmax.f32 %v742_v60, 0.0  ;;  %vm371_vm2 = vcmp.ge.s32.totalorder %v2743_v21, 65  ;;  %v430_v38 = vmul.f32 %v2773_v51, %v2423_v11  ;;  %v492_v59 = vsel %vm490_vm0, %v487_v42, %v488_v13  ;;  %v1527_v21 = vld [vmem:[%s2379_s9 + $0x17] sm:$0x1] }
  0xdc   : > { %v540_v62 = vmul.f32 %v532_v15, %v493_v63  ;;  %v2791_v39 = vadd.f32 %v696_v57, %v675_v48  ;;  %v408_v31 = vadd.f32 %v2421_v10, %v399_v37  ;;  %v787_v61 = vsel %vm2754_vm15, %v2557_v29, %v773_v16  ;;  %vm2843_vm8 = vmor %vm363_vm1, %vm371_vm2 }
  0xdd   : > { %v758_v63 = vmin.f32 %v750_v23, 6.0  ;;  %v517_v42 = vadd.f32 3.0, %v492_v59  ;;  %v2806_v48 = vadd.s32 %v2396_v3, %v346_v34  ;;  %v461_v16 = vmul.f32 %v2787_v49, %v2442_v19 }
  0xde   : > { %v548_v57 = vmul.f32 0.16666667, %v540_v62  ;;  %v715_v56 = vrot.slane %v2791_v39, 7  ;;  %v438_v60 = vadd.f32 %v430_v38, %v408_v31  ;;  %v638_v37 = vmul.f32 %v2460_v25, %v2767_v46  ;;  %v1495_v62 = vld [vmem:[%s2379_s9 + $0xf] sm:$0x1] }
  0xdf   : > { %v766_v15 = vmul.f32 %v758_v63, %v719_v53  ;;  %v525_v30 = vmax.f32 %v517_v42, 0.0  ;;  %v668_v23 = vmul.f32 %v2773_v51, %v2466_v27  ;;  %v697_v53 = vmul.f32 %v2787_v49, %v2469_v28  ;;  %v1505_v31 = vld [vmem:[%s2379_s9 + $0x17] sm:$0x1] }
  0xe0   : > { %v562_v3 = vsel %vm2801_vm4, %v2545_v14, %v548_v57  ;;  %v718_v34 = vsel %vm490_vm0, %v714_v50, %v715_v56  ;;  %v469_v38 = vadd.f32 %v461_v16, %v438_v60  ;;  %v578_v63 = vld [vmem:[#allocation2 + $0x20] sm:$0xff]  ;;  %v647_v46 = vadd.f32 %v2463_v26, %v638_v37 }
  0xe1   : > { %571 = vst.msk [vmem:[#allocation2 + $0x28] sm:$0xff] %vm565_vm3, %v562_v3  ;;  %v774_v42 = vmul.f32 0.16666667, %v766_v15  ;;  %v533_v51 = vmin.f32 %v525_v30, 6.0  ;;  %v743_v52 = vadd.f32 3.0, %v718_v34  ;;  %795 = vst.msk [vmem:[#allocation2 + $0x20] sm:$0xff] %vm565_vm3, %v787_v61  ;;  %590 = vrot.lane.b32.xlu0 %v578_v63, %s2088_s17  ;;  %v410_v57 = vmul.f32 %v409_v40, %v2418_v9 }
  0xe2   : > { %vm364_vm5 = vcmp.eq.s32.totalorder %v2806_v48, 0  ;;  %vm372_vm7 = vcmp.ge.s32.totalorder %v2806_v48, 65  ;;  %v489_v50 = vrot.slane %v469_v38, 7  ;;  %v676_v15 = vadd.f32 %v668_v23, %v647_v46 }
  0xe3   : > { %v788_v60 = vsel %vm2801_vm4, %v2557_v29, %v774_v42  ;;  %v541_v16 = vmul.f32 %v533_v51, %v492_v59  ;;  %v751_v61 = vmax.f32 %v743_v52, 0.0  ;;  %v411_v40 = vadd.f32 %v410_v57, %v2421_v10  ;;  %v648_v51 = vld [vmem:[%s2379_s9 + $0x7] sm:$0x1]  ;;  %v1517_v52 = vld [vmem:[%s2379_s9 + $0xf] sm:$0x1]  ;;  %vm2904_vm14 = vmor %vm364_vm5, %vm372_vm7 }
  0xe4   : > { %v491_v9 = vsel %vm490_vm0, %v488_v13, %v489_v50  ;;  %v441_v37 = vmul.f32 %v1495_v62, %v2423_v11  ;;  %v472_v3 = vmul.f32 %v1505_v31, %v2442_v19  ;;  %v705_v38 = vadd.f32 %v697_v53, %v676_v15 }
  0xe5   : > { %v549_v46 = vmul.f32 0.16666667, %v541_v16  ;;  %v759_v59 = vmin.f32 %v751_v61, 6.0  ;;  %v518_v23 = vadd.f32 3.0, %v491_v9  ;;  %vm474_vm11 = vcmp.eq.s32.totalorder %v2388_v1, 0 }
  0xe6   : > { %v442_v63 = vadd.f32 %v441_v37, %v411_v40  ;;  %v3450_v42 = vrot.slane %v2552_v22, 7  ;;  %v2861_v10 = vsub.s32 0, %v2388_v1  ;;  %v716_v62 = vrot.slane %v705_v38, 7 }
  0xe7   : > { %v563_v11 = vsel %vm2843_vm8, %v2545_v14, %v549_v46  ;;  %v767_v19 = vmul.f32 %v759_v59, %v718_v34  ;;  %v526_v53 = vmax.f32 %v518_v23, 0.0  ;;  %v678_v57 = vmul.f32 %v1517_v52, %v2466_v27 }
  0xe8   : > { %v498_v13 = vsel %vm490_vm0, %v489_v50, %v3450_v42  ;;  %v579_v22 = vld [vmem:[#allocation2 + $0x28] sm:$0xff]  ;;  %572 = vst.msk [vmem:[#allocation2 + $0x30] sm:$0xff] %vm565_vm3, %v563_v11  ;;  %v473_v31 = vadd.f32 %v472_v3, %v442_v63  ;;  %v649_v50 = vmul.f32 %v648_v51, %v2460_v25  ;;  %v707_v16 = vmul.f32 %v1527_v21, %v2469_v28 }
  0xe9   : > { %796 = vst.msk [vmem:[#allocation2 + $0x28] sm:$0xff] %vm565_vm3, %v788_v60  ;;  %592 = vrot.lane.b32.xlu1 %v579_v22, %s2088_s17  ;;  %v775_v34 = vmul.f32 0.16666667, %v767_v19  ;;  %v534_v61 = vmin.f32 %v526_v53, 6.0  ;;  %v717_v15 = vsel %vm490_vm0, %v715_v56, %v716_v62  ;;  %vm357_vm12 = vcmp.eq.s32.totalorder %v2676_v47, 0 }
  0xea   : > { %vm365_vm13 = vcmp.ge.s32.totalorder %v2676_v47, 65  ;;  %v3451_v25 = vrot.slane %v2573_v41, 7  ;;  %v744_v28 = vadd.f32 3.0, %v717_v15  ;;  %v502_v60 = vrot.slane %v473_v31, %v2861_v10 }
  0xeb   : > { %v650_v40 = vadd.f32 %v649_v50, %v2463_v26  ;;  %v2891_v39 = vstv %s2834_s28  ;;  %v789_v56 = vsel %vm2843_vm8, %v2557_v29, %v775_v34  ;;  %v542_v37 = vmul.f32 %v534_v61, %v491_v9  ;;  %vm2951_vm1 = vmor %vm357_vm12, %vm365_vm13 }
  0xec   : > { %v724_v27 = vsel %vm490_vm0, %v716_v62, %v3451_v25  ;;  %v852_v41 = vmul.f32 %v2891_v39, %v2399_v4  ;;  %v853_v3 = vmul.f32 %v2891_v39, %v2402_v5  ;;  %v752_v51 = vmax.f32 %v744_v28, 0.0 }
  0xed   : > { %v503_v52 = vsel %vm474_vm11, %v502_v60, %v498_v13  ;;  %v679_v9 = vadd.f32 %v678_v57, %v650_v40  ;;  %v2911_v46 = vstv %s2450_s2  ;;  %v550_v59 = vmul.f32 0.16666667, %v542_v37  ;;  %s1566_s2 = sshll.u32 (%p3465_p13), %s2029_s23, 3 }
  0xee   : > { %v511_v4 = vadd.f32 3.0, %v503_v52  ;;  %v861_v23 = vadd.f32 %v2911_v46, %v852_v41  ;;  %v862_v5 = vadd.f32 %v2911_v46, %v853_v3  ;;  %v760_v38 = vmin.f32 %v752_v51, 6.0  ;;  %s1068_s8 = ssub.s32 (%p3465_p13), 9, %s1566_s2 }
  0xef   : > { %v708_v48 = vadd.f32 %v707_v16, %v679_v9  ;;  %v2916_v21 = vstv %s2863_s13  ;;  %v2919_v63 = vstv %s2865_s30  ;;  %v580_v42 = vld [vmem:[#allocation2 + $0x30] sm:$0xff]  ;;  %v564_v13 = vsel %vm2904_vm14, %v2545_v14, %v550_v59  ;;  %p1069_p5 = scmp.lt.s32.totalorder (%p3465_p13), %s1068_s8, 8 }
  0xf0   : > { %v519_v11 = vmax.f32 %v511_v4, 0.0  ;;  %v882_v19 = vmul.f32 %v2409_v6, %v2916_v21  ;;  %v883_v53 = vmul.f32 %v2412_v7, %v2916_v21  ;;  %797 = vst.msk [vmem:[#allocation2 + $0x30] sm:$0xff] %vm565_vm3, %v789_v56  ;;  %594 = vrot.lane.b32.xlu0 %v580_v42, %s2088_s17  ;;  %573 = vst.msk [vmem:[#allocation2 + $0x38] sm:$0xff] %vm565_vm3, %v564_v13  ;;  %v2936_v34 = vstv %s1001_s24  ;;  %v800_v13 = vld [vmem:[#allocation2 + $0x8] sm:$0xff] }
  0xf1   : > { %v768_v62 = vmul.f32 %v760_v38, %v717_v15  ;;  %v728_v22 = vrot.slane %v708_v48, %v2861_v10  ;;  %v911_v31 = vmul.f32 %v2415_v8, %v2919_v63  ;;  %v912_v50 = vmul.f32 %v2426_v12, %v2919_v63 }
  0xf2   : > { %v527_v57 = vmin.f32 %v519_v11, 6.0  ;;  %v890_v6 = vadd.f32 %v882_v19, %v861_v23  ;;  %v891_v16 = vadd.f32 %v883_v53, %v862_v5  ;;  %v851_v15 = vmul.f32 %v2891_v39, %v2479_v33 }
  0xf3   : > { %v776_v7 = vmul.f32 0.16666667, %v768_v62  ;;  %v729_v61 = vsel %vm474_vm11, %v728_v22, %v724_v27  ;;  %v881_v25 = vmul.f32 %v2489_v36, %v2916_v21  ;;  %v910_v36 = vmul.f32 %v2505_v43, %v2919_v63 }
  0xf4   : > { %v535_v28 = vmul.f32 %v527_v57, %v503_v52  ;;  %v737_v8 = vadd.f32 3.0, %v729_v61  ;;  %v919_v60 = vadd.f32 %v911_v31, %v890_v6  ;;  %v920_v40 = vadd.f32 %v912_v50, %v891_v16 }
  0xf5   : > { %v790_v12 = vsel %vm2904_vm14, %v2557_v29, %v776_v7  ;;  %v860_v33 = vadd.f32 %v2911_v46, %v851_v15  ;;  %v854_v56 = vmul.f32 %v2891_v39, %v2524_v55  ;;  %v855_v47 = vmul.f32 %v2891_v39, %v2606_v17 }
  0xf6   : > { %v543_v37 = vmul.f32 0.16666667, %v535_v28  ;;  %v745_v41 = vmax.f32 %v737_v8, 0.0  ;;  %v930_v3 = vrot.slane %v919_v60, 7  ;;  %v931_v51 = vrot.slane %v920_v40, 7 }
  0xf7   : > { %v889_v52 = vadd.f32 %v881_v25, %v860_v33  ;;  %v863_v9 = vadd.f32 %v2911_v46, %v854_v56  ;;  %v884_v59 = vmul.f32 %v2543_v2, %v2916_v21  ;;  %v581_v4 = vld [vmem:[#allocation2 + $0x38] sm:$0xff]  ;;  %v885_v5 = vmul.f32 %v2609_v18, %v2916_v21 }
  0xf8   : > { %v557_v43 = vsel %vm2951_vm1, %v2545_v14, %v543_v37  ;;  %v753_v23 = vmin.f32 %v745_v41, 6.0  ;;  %v942_v55 = vsel %vm490_vm0, %v930_v3, %v931_v51  ;;  %798 = vst.msk [vmem:[#allocation2 + $0x38] sm:$0xff] %vm565_vm3, %v790_v12  ;;  %596 = vrot.lane.b32.xlu1 %v581_v4, %s2088_s17  ;;  %v864_v38 = vadd.f32 %v2911_v46, %v855_v47  ;;  %v802_v25 = vld [vmem:[#allocation2 + $0x18] sm:$0xff]  ;;  %v801_v47 = vld [vmem:[#allocation2 + $0x10] sm:$0xff]  ;;  %v804_v4 = vld [vmem:[#allocation2 + $0x28] sm:$0xff] }
  0xf9   : > { %566 = vst.msk [vmem:[#allocation2] sm:$0xff] %vm565_vm3, %v557_v43  ;;  %v959_v17 = vadd.f32 3.0, %v942_v55  ;;  %v2975_v2 = vadd.f32 %v910_v36, %v889_v52  ;;  %v892_v48 = vadd.f32 %v884_v59, %v863_v9  ;;  %v913_v11 = vmul.f32 %v2555_v24, %v2919_v63  ;;  %v868_v41 = vld [vmem:[%s2379_s9 + $0x7] sm:$0x1] }
  0xfa   : > { %v761_v42 = vmul.f32 %v753_v23, %v729_v61  ;;  %v914_v18 = vmul.f32 %v2620_v32, %v2919_v63  ;;  %v856_v19 = vmul.f32 %v2891_v39, %v2660_v44  ;;  %v893_v22 = vadd.f32 %v885_v5, %v864_v38 }
  0xfb   : > { %v967_v53 = vmax.f32 %v959_v17, 0.0  ;;  %v929_v62 = vrot.slane %v2975_v2, 7  ;;  %v857_v31 = vmul.f32 %v2891_v39, %v2717_v35  ;;  %v921_v57 = vadd.f32 %v913_v11, %v892_v48 }
  0xfc   : > { %v769_v50 = vmul.f32 0.16666667, %v761_v42  ;;  %v865_v6 = vadd.f32 %v2911_v46, %v856_v19  ;;  %v886_v24 = vmul.f32 %v2663_v45, %v2916_v21  ;;  %809 = vrot.lane.b32.xlu1 %v800_v13, %s2088_s17  ;;  %v922_v44 = vadd.f32 %v914_v18, %v893_v22  ;;  %v1547_v18 = vld [vmem:[%s2379_s9 + $0xf] sm:$0x1] }
  0xfd   : > { %v975_v16 = vmin.f32 %v967_v53, 6.0  ;;  %v943_v32 = vsel %vm490_vm0, %v929_v62, %v930_v3  ;;  %v866_v7 = vadd.f32 %v2911_v46, %v857_v31  ;;  %v932_v15 = vrot.slane %v921_v57, 7 }
  0xfe   : > { %v783_v35 = vsel %vm2951_vm1, %v2557_v29, %v769_v50  ;;  %v958_v61 = vadd.f32 3.0, %v943_v32  ;;  %v887_v45 = vmul.f32 %v2720_v20, %v2916_v21  ;;  %v933_v8 = vrot.slane %v922_v44, 7  ;;  %v1557_v50 = vld [vmem:[%s2379_s9 + $0x17] sm:$0x1]  ;;  %s321_s9 = sand.u32 1, %s1997_s15   ;;  %s3466_s15 = sld [smem:[#allocation17_spill]] (%p3465_p13) }
  0xff   : > { %v983_v28 = vmul.f32 %v975_v16, %v942_v55  ;;  %v894_v60 = vadd.f32 %v886_v24, %v865_v6  ;;  %v915_v40 = vmul.f32 %v2672_v54, %v2919_v63  ;;  %v941_v36 = vsel %vm490_vm0, %v931_v51, %v932_v15  ;;  %v803_v6 = vld [vmem:[#allocation2 + $0x20] sm:$0xff]  ;;  %v806_v44 = vld [vmem:[#allocation2 + $0x38] sm:$0xff]  ;;  %s1595_s14 = smul.u32 192, %s321_s9 }
 0x100   : > { %v574_v12 = vld [vmem:[#allocation2] sm:$0xff]  ;;  %v966_v33 = vmax.f32 %v958_v61, 0.0  ;;  %v895_v56 = vadd.f32 %v887_v45, %v866_v7  ;;  %v916_v37 = vmul.f32 %v2736_v0, %v2919_v63  ;;  %v940_v3 = vsel %vm490_vm0, %v932_v15, %v933_v8  ;;  %813 = vrot.lane.b32.xlu1 %v802_v25, %s2088_s17  ;;  %v3456_v0 = vld [vmem:[#allocation27_spill] sm:$0xff] }
 0x101   : > { %791 = vst.msk [vmem:[#allocation2] sm:$0xff] %vm565_vm3, %v783_v35  ;;  %582 = vrot.lane.b32.xlu0 %v574_v12, %s2088_s17  ;;  %v991_v20 = vmul.f32 0.16666667, %v983_v28  ;;  %v960_v52 = vadd.f32 3.0, %v941_v36  ;;  %v923_v54 = vadd.f32 %v915_v40, %v894_v60  ;;  %v961_v9 = vadd.f32 3.0, %v940_v3  ;;  %s3094_s22 = scalar_lea.vmem [#allocation11], %s1595_s14  }
 0x102   : > { %v974_v51 = vmin.f32 %v966_v33, 6.0  ;;  %v924_v59 = vadd.f32 %v916_v37, %v895_v56  ;;  %v858_v43 = vmul.f32 %v2891_v39, %v3456_v0  ;;  %v869_v38 = vmul.f32 %v868_v41, %v2891_v39  ;;  %v3458_v39 = vld [vmem:[#allocation28_spill] sm:$0xff] }
 0x103   : > { %v1005_v55 = vsel %vm2590_vm6, %v2936_v34, %v991_v20  ;;  %v968_v5 = vmax.f32 %v960_v52, 0.0  ;;  %v934_v17 = vrot.slane %v923_v54, 7  ;;  %v969_v42 = vmax.f32 %v961_v9, 0.0 }
 0x104   : > { %1013 = vst.msk [vmem:[#allocation2 + $0x10] sm:$0xff] %vm565_vm3, %v1005_v55  ;;  %v982_v48 = vmul.f32 %v974_v51, %v943_v32  ;;  %v935_v13 = vrot.slane %v924_v59, 7  ;;  %v867_v11 = vadd.f32 %v2911_v46, %v858_v43  ;;  %817 = vrot.lane.b32.xlu1 %v804_v4, %s2088_s17  ;;  %v870_v22 = vadd.f32 %v869_v38, %v2911_v46  ;;  %s1596_s11 = smul.u32 (%p3465_p13), 27, %s3466_s15 }
 0x105   : > { %811 = vrot.lane.b32.xlu0 %v801_v47, %s2088_s17  ;;  %v976_v19 = vmin.f32 %v968_v5, 6.0  ;;  %v939_v53 = vsel %vm490_vm0, %v933_v8, %v934_v17  ;;  %v888_v31 = vmul.f32 %v3458_v39, %v2916_v21  ;;  %v977_v24 = vmin.f32 %v969_v42, 6.0 }
 0x106   : > { %v990_v57 = vmul.f32 0.16666667, %v982_v48  ;;  %v938_v16 = vsel %vm490_vm0, %v934_v17, %v935_v13  ;;  %v962_v32 = vadd.f32 3.0, %v939_v53  ;;  %v898_v15 = vmul.f32 %v1547_v18, %v2916_v21  ;;  %s1074_s25 = sadd.s32 (%p3465_p13), %s1596_s11, %s1566_s2 }
 0x107   : > { %v984_v7 = vmul.f32 %v976_v19, %v941_v36  ;;  %v963_v35 = vadd.f32 3.0, %v938_v16  ;;  %v896_v61 = vadd.f32 %v888_v31, %v867_v11  ;;  %v985_v45 = vmul.f32 %v977_v24, %v940_v3  ;;  %v805_v36 = vld [vmem:[#allocation2 + $0x30] sm:$0xff]  ;;  %s1568_s29 = sshll.u32 (%p3465_p13), %s1074_s25, 3 }
 0x108   : > { %v1004_v46 = vsel %vm2641_vm9, %v2936_v34, %v990_v57  ;;  %v970_v28 = vmax.f32 %v962_v32, 0.0  ;;  %v917_v8 = vmul.f32 %v2787_v49, %v2919_v63  ;;  %v899_v12 = vadd.f32 %v898_v15, %v870_v22  ;;  %821 = vrot.lane.b32.xlu1 %v806_v44, %s2088_s17  ;;  %v799_v4 = vld [vmem:[#allocation2] sm:$0xff]  ;;  %s3222_s6 = scalar_lea.vmem (%p3465_p13), %s3467_s20, %s1568_s29  }
 0x109   : > { %1012 = vst.msk [vmem:[#allocation2 + $0x8] sm:$0xff] %vm565_vm3, %v1004_v46  ;;  %815 = vrot.lane.b32.xlu0 %v803_v6, %s2088_s17  ;;  %v992_v60 = vmul.f32 0.16666667, %v984_v7  ;;  %v971_v40 = vmax.f32 %v963_v35, 0.0  ;;  %v927_v33 = vmul.f32 %v1557_v50, %v2919_v63  ;;  %v993_v21 = vmul.f32 0.16666667, %v985_v45 }
 0x10a   : > { %v978_v56 = vmin.f32 %v970_v28, 6.0  ;;  %v925_v37 = vadd.f32 %v917_v8, %v896_v61  ;;  %v3462_v6 = vlaneseq }
 0x10b   : > { %v1006_v20 = vsel %vm2684_vm10, %v2936_v34, %v992_v60  ;;  %v979_v49 = vmin.f32 %v971_v40, 6.0  ;;  %v928_v3 = vadd.f32 %v927_v33, %v899_v12  ;;  %v1007_v54 = vsel %vm2754_vm15, %v2936_v34, %v993_v21  ;;  %v1021_v48 = vld [vmem:[#allocation2 + $0x10] sm:$0xff] }
 0x10c   : > { %1014 = vst.msk [vmem:[#allocation2 + $0x18] sm:$0xff] %vm565_vm3, %v1006_v20  ;;  %v986_v47 = vmul.f32 %v978_v56, %v939_v53  ;;  %v936_v63 = vrot.slane %v925_v37, 7  ;;  %1015 = vst.msk [vmem:[#allocation2 + $0x20] sm:$0xff] %vm565_vm3, %v1007_v54  ;;  %v599_v24 = vand.u32 127, %v3462_v6 }
 0x10d   : > { %v987_v51 = vmul.f32 %v979_v49, %v938_v16  ;;  %819 = vrot.lane.b32.xlu0 %v805_v36, %s2088_s17  ;;  %v948_v9 = vrot.slane %v928_v3, %v2861_v10 }
 0x10e   : > { %v994_v59 = vmul.f32 0.16666667, %v986_v47  ;;  %v944_v0 = vsel %vm490_vm0, %v936_v63, %v929_v62  ;;  %v937_v43 = vsel %vm490_vm0, %v935_v13, %v936_v63  ;;  %vm600_vm0 = vcmp.eq.s32.totalorder %v599_v24, 0 }
 0x10f   : > { %v995_v23 = vmul.f32 0.16666667, %v987_v51  ;;  %v949_v55 = vsel %vm474_vm11, %v948_v9, %v944_v0  ;;  %v964_v5 = vadd.f32 3.0, %v937_v43  ;;  %vm601_vm6 = vcmp.eq.s32.totalorder %v599_v24, 65 }
 0x110   : > { %v1008_v17 = vsel %vm2801_vm4, %v2936_v34, %v994_v59  ;;  %v957_v10 = vadd.f32 3.0, %v949_v55  ;;  %v1020_v38 = vld [vmem:[#allocation2 + $0x8] sm:$0xff]  ;;  %vm3087_vm9 = vmor %vm600_vm0, %vm601_vm6 }
 0x111   : > { %v1009_v2 = vsel %vm2843_vm8, %v2936_v34, %v995_v23  ;;  %1016 = vst.msk [vmem:[#allocation2 + $0x28] sm:$0xff] %vm565_vm3, %v1008_v17  ;;  %807 = vrot.lane.b32.xlu0 %v799_v4, %s2088_s17  ;;  %v972_v62 = vmax.f32 %v964_v5, 0.0  ;;  %1029 = vrot.lane.b32.xlu1 %v1020_v38, %s2088_s17 }
 0x112   : > { %1017 = vst.msk [vmem:[#allocation2 + $0x30] sm:$0xff] %vm565_vm3, %v1009_v2  ;;  %v965_v1 = vmax.f32 %v957_v10, 0.0 }
 0x113   : > { %v980_v42 = vmin.f32 %v972_v62, 6.0  ;;  %v1022_v58 = vld [vmem:[#allocation2 + $0x18] sm:$0xff]  ;;  %v1023_v18 = vld [vmem:[#allocation2 + $0x20] sm:$0xff] }
 0x114   : > { %v973_v13 = vmin.f32 %v965_v1, 6.0 }
 0x115   : > { %v988_v11 = vmul.f32 %v980_v42, %v937_v43  ;;  %1031 = vrot.lane.b32.xlu0 %v1021_v48, %s2088_s17  ;;  %1033 = vrot.lane.b32.xlu1 %v1022_v58, %s2088_s17 }
 0x116   : > { %v981_v30 = vmul.f32 %v973_v13, %v949_v55 }
 0x117   : > { %v996_v19 = vmul.f32 0.16666667, %v988_v11 }
 0x118   : > { %v989_v53 = vmul.f32 0.16666667, %v981_v30  ;;  %v1024_v22 = vld [vmem:[#allocation2 + $0x28] sm:$0xff] }
 0x119   : > { %v1010_v39 = vsel %vm2904_vm14, %v2936_v34, %v996_v19  ;;  %1035 = vrot.lane.b32.xlu0 %v1023_v18, %s2088_s17  ;;  %1037 = vrot.lane.b32.xlu1 %v1024_v22, %s2088_s17  ;;  %v1025_v26 = vld [vmem:[#allocation2 + $0x30] sm:$0xff] }
 0x11a   : > { %v1003_v31 = vsel %vm2951_vm1, %v2936_v34, %v989_v53  ;;  %1018 = vst.msk [vmem:[#allocation2 + $0x38] sm:$0xff] %vm565_vm3, %v1010_v39 }
 0x11b   : > { %1011 = vst.msk [vmem:[#allocation2] sm:$0xff] %vm565_vm3, %v1003_v31  ;;  %vm611_vm3 = vcmask 539648  }
 0x121   : > { %v1026_v50 = vld [vmem:[#allocation2 + $0x38] sm:$0xff] }
 0x122   : > { %v1019_v57 = vld [vmem:[#allocation2] sm:$0xff]  ;;  %1041 = vrot.lane.b32.xlu1 %v1026_v50, %s2088_s17 }
 0x123   : > { %1027 = vrot.lane.b32.xlu0 %v1019_v57, %s2088_s17 }
 0x127   : > { %1039 = vrot.lane.b32.xlu0 %v1025_v26, %s2088_s17 }
 0x13c   : > { %v587_v16 = vpop.permute.xlu1 %586 }
 0x13d   : > { %v605_v32 = vsel %vm3087_vm9, %v2545_v14, %v587_v16 }
 0x13e   : > { %614 = vst.msk [vmem:[%s3094_s22 + $0x10] sm:$0xff] %vm611_vm3, %v605_v32 }
 0x142   : > { %v585_v44 = vpop.permute.xlu0 %584 }
 0x143   : > { %v604_v7 = vsel %vm3087_vm9, %v2545_v14, %v585_v44 }
 0x144   : > { %613 = vst.msk [vmem:[%s3094_s22 + $0x8] sm:$0xff] %vm611_vm3, %v604_v7 }
 0x148   : > { %v589_v35 = vpop.permute.xlu1 %588 }
 0x149   : > { %v606_v61 = vsel %vm3087_vm9, %v2545_v14, %v589_v35 }
 0x14a   : > { %615 = vst.msk [vmem:[%s3094_s22 + $0x18] sm:$0xff] %vm611_vm3, %v606_v61 }
 0x153   : > { %v591_v15 = vpop.permute.xlu0 %590 }
 0x154   : > { %v607_v25 = vsel %vm3087_vm9, %v2545_v14, %v591_v15 }
 0x155   : > { %616 = vst.msk [vmem:[%s3094_s22 + $0x20] sm:$0xff] %vm611_vm3, %v607_v25 }
 0x15b   : > { %v593_v46 = vpop.permute.xlu1 %592 }
 0x15c   : > { %v608_v45 = vsel %vm3087_vm9, %v2545_v14, %v593_v46 }
 0x15d   : > { %617 = vst.msk [vmem:[%s3094_s22 + $0x28] sm:$0xff] %vm611_vm3, %v608_v45 }
 0x162   : > { %v595_v28 = vpop.permute.xlu0 %594 }
 0x163   : > { %v609_v8 = vsel %vm3087_vm9, %v2545_v14, %v595_v28 }
 0x164   : > { %618 = vst.msk [vmem:[%s3094_s22 + $0x30] sm:$0xff] %vm611_vm3, %v609_v8 }
 0x16a   : > { %v597_v60 = vpop.permute.xlu1 %596 }
 0x16b   : > { %v610_v40 = vsel %vm3087_vm9, %v2545_v14, %v597_v60 }
 0x16c   : > { %619 = vst.msk [vmem:[%s3094_s22 + $0x38] sm:$0xff] %vm611_vm3, %v610_v40 }
 0x16e   : > { %v810_v12 = vpop.permute.xlu1 %809 }
 0x16f   : > { %v824_v33 = vsel %vm3087_vm9, %v2557_v29, %v810_v12 }
 0x170   : > { %1529 = vst.msk [vmem:[%s3094_s22 + $0x48] sm:$0xff] %vm611_vm3, %v824_v33 }
 0x172   : > { %v814_v36 = vpop.permute.xlu1 %813 }
 0x173   : > { %v583_v21 = vpop.permute.xlu0 %582  ;;  %v826_v37 = vsel %vm3087_vm9, %v2557_v29, %v814_v36 }
 0x174   : > { %v603_v56 = vsel %vm3087_vm9, %v2545_v14, %v583_v21  ;;  %1531 = vst.msk [vmem:[%s3094_s22 + $0x58] sm:$0xff] %vm611_vm3, %v826_v37 }
 0x175   : > { %612 = vst.msk [vmem:[%s3094_s22] sm:$0xff] %vm611_vm3, %v603_v56 }
 0x176   : > { %v818_v20 = vpop.permute.xlu1 %817 }
 0x177   : > { %v812_v41 = vpop.permute.xlu0 %811  ;;  %v828_v3 = vsel %vm3087_vm9, %v2557_v29, %v818_v20 }
 0x178   : > { %v825_v49 = vsel %vm3087_vm9, %v2557_v29, %v812_v41  ;;  %1533 = vst.msk [vmem:[%s3094_s22 + $0x68] sm:$0xff] %vm611_vm3, %v828_v3 }
 0x179   : > { %1530 = vst.msk [vmem:[%s3094_s22 + $0x50] sm:$0xff] %vm611_vm3, %v825_v49 }
 0x17a   : > { %v822_v52 = vpop.permute.xlu1 %821 }
 0x17b   : > { %v816_v14 = vpop.permute.xlu0 %815  ;;  %v830_v47 = vsel %vm3087_vm9, %v2557_v29, %v822_v52 }
 0x17c   : > { %v827_v54 = vsel %vm3087_vm9, %v2557_v29, %v816_v14  ;;  %1535 = vst.msk [vmem:[%s3094_s22 + $0x78] sm:$0xff] %vm611_vm3, %v830_v47 }
 0x17d   : > { %1532 = vst.msk [vmem:[%s3094_s22 + $0x60] sm:$0xff] %vm611_vm3, %v827_v54 }
 0x17f   : > { %v820_v63 = vpop.permute.xlu0 %819 }
 0x180   : > { %v829_v51 = vsel %vm3087_vm9, %v2557_v29, %v820_v63 }
 0x181   : > { %1534 = vst.msk [vmem:[%s3094_s22 + $0x70] sm:$0xff] %vm611_vm3, %v829_v51 }
 0x183   : > { %v808_v9 = vpop.permute.xlu0 %807  ;;  %v1030_v59 = vpop.permute.xlu1 %1029 }
 0x184   : > { %v823_v4 = vsel %vm3087_vm9, %v2557_v29, %v808_v9  ;;  %v1044_v0 = vsel %vm3087_vm9, %v2936_v34, %v1030_v59 }
 0x185   : > { %1528 = vst.msk [vmem:[%s3094_s22 + $0x40] sm:$0xff] %vm611_vm3, %v823_v4  ;;  %1559 = vst.msk [vmem:[%s3094_s22 + $0x88] sm:$0xff] %vm611_vm3, %v1044_v0 }
 0x187   : > { %v1032_v43 = vpop.permute.xlu0 %1031  ;;  %v1034_v23 = vpop.permute.xlu1 %1033 }
 0x188   : > { %v1045_v55 = vsel %vm3087_vm9, %v2936_v34, %v1032_v43  ;;  %v1046_v29 = vsel %vm3087_vm9, %v2936_v34, %v1034_v23 }
 0x189   : > { %1560 = vst.msk [vmem:[%s3094_s22 + $0x90] sm:$0xff] %vm611_vm3, %v1045_v55  ;;  %1561 = vst.msk [vmem:[%s3094_s22 + $0x98] sm:$0xff] %vm611_vm3, %v1046_v29 }
 0x18b   : > { %v1036_v5 = vpop.permute.xlu0 %1035  ;;  %v1038_v17 = vpop.permute.xlu1 %1037 }
 0x18c   : > { %v1047_v10 = vsel %vm3087_vm9, %v2936_v34, %v1036_v5  ;;  %v1048_v38 = vsel %vm3087_vm9, %v2936_v34, %v1038_v17 }
 0x18d   : > { %1562 = vst.msk [vmem:[%s3094_s22 + $0xa0] sm:$0xff] %vm611_vm3, %v1047_v10  ;;  %1563 = vst.msk [vmem:[%s3094_s22 + $0xa8] sm:$0xff] %vm611_vm3, %v1048_v38 }
 0x194   : > { %v1042_v2 = vpop.permute.xlu1 %1041 }
 0x195   : > { %v1028_v62 = vpop.permute.xlu0 %1027  ;;  %v1050_v1 = vsel %vm3087_vm9, %v2936_v34, %v1042_v2  ;;  %1066 = sbr.rel (!%p3465_p13) target bundleno = 465 (0x1d1), region = 56 }
 0x196   : > { %v1043_v48 = vsel %vm3087_vm9, %v2936_v34, %v1028_v62  ;;  %1565 = vst.msk [vmem:[%s3094_s22 + $0xb8] sm:$0xff] %vm611_vm3, %v1050_v1 }
 0x197   : > { %1558 = vst.msk [vmem:[%s3094_s22 + $0x80] sm:$0xff] %vm611_vm3, %v1043_v48 }
 0x199   : > { %v1040_v42 = vpop.permute.xlu0 %1039 }
 0x19a   : > { %v1049_v58 = vsel %vm3087_vm9, %v2936_v34, %v1040_v42 }
 0x19b   : > { %1564 = vst.msk [vmem:[%s3094_s22 + $0xb0] sm:$0xff] %vm611_vm3, %v1049_v58 }
 0x19c   : > { %s3504_s8 = smov (!%p1069_p5, %s1068_s8), 8 }
 0x19d   : > { %s1071_s12 = smul.u32 384, %s3504_s8 }
 0x19f   : > { %p1569_p10 = scmp.eq.s32.totalorder %s1071_s12, 0 }
 0x1a0   : > { %s3226_s7 = sshrl.u32 (!%p1569_p10), %s3504_s8, 3 }
 0x1a1   : > { %1079 = sbr.rel (%p1569_p10) target bundleno = 465 (0x1d1), region = 60  ;;  %p1570_p6 = scmp.le.s32.totalorder (!%p1569_p10), %s3226_s7, 0 }
 0x1a8   : > { %1367 = sbr.rel (%p1570_p6) target bundleno = 444 (0x1bc), region = 158  ;;  %s3468_s23 = smov (!%p1570_p6), %s3222_s6 }
 0x1a9   : > { %s3469_s1 = smov (!%p1570_p6), %s3094_s22  ;;  %s3235_s17 = smov (!%p1570_p6), 0  }
 0x1aa   : > { %s3237_s28 = smov (!%p1570_p6), 0  }
 0x1af LB: >> { %v1191_v34 = vld [vmem:[%s2053_s1] sm:$0xff]  ;;  %v1193_v13 = vld [vmem:[%s2053_s1 + $0x8] sm:$0xff]  ;;  %v1195_v11 = vld [vmem:[%s2053_s1 + $0x10] sm:$0xff]  ;;  %s1239_s13 = sadd.s32 1, %s2057_s17  ;;  %s1185_s28 = sadd.s32 1, %s2061_s28   ;;  %s2061_s28 = sphi %s3237_s28, %s1185_s28   ;;  %s2057_s17 = sphi %s3235_s17, %s3472_s17   ;;  %s2053_s1 = sphi %s3469_s1, %s3471_s1   ;;  %s2049_s23 = sphi %s3468_s23, %s3470_s23  }
 0x1b0   : >> { %1192 = vst [vmem:[%s2049_s23] sm:$0xff] %v1191_v34  ;;  %1194 = vst [vmem:[%s2049_s23 + $0x8] sm:$0xff] %v1193_v13  ;;  %v1197_v30 = vld [vmem:[%s2053_s1 + $0x18] sm:$0xff]  ;;  %v1199_v18 = vld [vmem:[%s2053_s1 + $0x20] sm:$0xff]  ;;  %p1240_p12 = scmp.ge.s32.totalorder %s1239_s13, %s3226_s7  ;;  %p1184_p9 = scmp.ge.s32.totalorder %s1185_s28, %s3226_s7 }
 0x1b1   : >> { %1196 = vst [vmem:[%s2049_s23 + $0x10] sm:$0xff] %v1195_v11  ;;  %v1201_v19 = vld [vmem:[%s2053_s1 + $0x28] sm:$0xff]  ;;  %1198 = vst [vmem:[%s2049_s23 + $0x18] sm:$0xff] %v1197_v30  ;;  %v1203_v53 = vld [vmem:[%s2053_s1 + $0x30] sm:$0xff] }
 0x1b2   : >> { %1200 = vst [vmem:[%s2049_s23 + $0x20] sm:$0xff] %v1199_v18  ;;  %1202 = vst [vmem:[%s2049_s23 + $0x28] sm:$0xff] %v1201_v19  ;;  %v1205_v22 = vld [vmem:[%s2053_s1 + $0x38] sm:$0xff]  ;;  %v1207_v39 = vld [vmem:[%s2053_s1 + $0x40] sm:$0xff]  ;;  %s3506_s13 = smov (%p1240_p12, %s1239_s13), 0 }
 0x1b3   : >> { %1204 = vst [vmem:[%s2049_s23 + $0x30] sm:$0xff] %v1203_v53  ;;  %1206 = vst [vmem:[%s2049_s23 + $0x38] sm:$0xff] %v1205_v22  ;;  %v1209_v31 = vld [vmem:[%s2053_s1 + $0x48] sm:$0xff]  ;;  %v1211_v50 = vld [vmem:[%s2053_s1 + $0x50] sm:$0xff]  ;;  %s1571_s30 = sshll.u32 %s3506_s13, 6  ;;  %s3472_s17 = smov %s3506_s13 }
 0x1b4   : >> { %1208 = vst [vmem:[%s2049_s23 + $0x48] sm:$0xff] %v1207_v39  ;;  %v1213_v57 = vld [vmem:[%s2053_s1 + $0x58] sm:$0xff]  ;;  %1210 = vst [vmem:[%s2049_s23 + $0x50] sm:$0xff] %v1209_v31  ;;  %v1215_v26 = vld [vmem:[%s2053_s1 + $0x60] sm:$0xff]  ;;  %s1244_s0 = scalar_lea.vmem %s3094_s22, %s1571_s30 [#allocation11]   ;;  %s1245_s24 = scalar_lea.vmem %s3222_s6, %s1571_s30  }
 0x1b5   : >> { %1212 = vst [vmem:[%s2049_s23 + $0x58] sm:$0xff] %v1211_v50  ;;  %1214 = vst [vmem:[%s2049_s23 + $0x60] sm:$0xff] %v1213_v57  ;;  %v1217_v6 = vld [vmem:[%s2053_s1 + $0x68] sm:$0xff]  ;;  %v1219_v24 = vld [vmem:[%s2053_s1 + $0x70] sm:$0xff]  ;;  %1187 = sbr.rel (!%p1184_p9) target bundleno = 431 (0x1af), region = 164 }
 0x1b6   : >> { %1216 = vst [vmem:[%s2049_s23 + $0x68] sm:$0xff] %v1215_v26  ;;  %1218 = vst [vmem:[%s2049_s23 + $0x70] sm:$0xff] %v1217_v6  ;;  %v1221_v27 = vld [vmem:[%s2053_s1 + $0x78] sm:$0xff]  ;;  %v1223_v16 = vld [vmem:[%s2053_s1 + $0x80] sm:$0xff] }
 0x1b7   : >> { %1220 = vst [vmem:[%s2049_s23 + $0x78] sm:$0xff] %v1219_v24  ;;  %v1225_v32 = vld [vmem:[%s2053_s1 + $0x88] sm:$0xff]  ;;  %1222 = vst [vmem:[%s2049_s23 + $0x80] sm:$0xff] %v1221_v27  ;;  %v1227_v44 = vld [vmem:[%s2053_s1 + $0x90] sm:$0xff] }
 0x1b8   : >> { %1224 = vst [vmem:[%s2049_s23 + $0x90] sm:$0xff] %v1223_v16  ;;  %1226 = vst [vmem:[%s2049_s23 + $0x98] sm:$0xff] %v1225_v32  ;;  %v1229_v7 = vld [vmem:[%s2053_s1 + $0x98] sm:$0xff]  ;;  %v1231_v35 = vld [vmem:[%s2053_s1 + $0xa0] sm:$0xff] }
 0x1b9   : >> { %1228 = vst [vmem:[%s2049_s23 + $0xa0] sm:$0xff] %v1227_v44  ;;  %1230 = vst [vmem:[%s2049_s23 + $0xa8] sm:$0xff] %v1229_v7  ;;  %v1233_v61 = vld [vmem:[%s2053_s1 + $0xa8] sm:$0xff]  ;;  %v1235_v15 = vld [vmem:[%s2053_s1 + $0xb0] sm:$0xff] }
 0x1ba   : >> { %1232 = vst [vmem:[%s2049_s23 + $0xb0] sm:$0xff] %v1231_v35  ;;  %v1237_v25 = vld [vmem:[%s2053_s1 + $0xb8] sm:$0xff]  ;;  %1234 = vst [vmem:[%s2049_s23 + $0xb8] sm:$0xff] %v1233_v61  ;;  %s3471_s1 = smov %s1244_s0 }
 0x1bb   : >> { %1236 = vst [vmem:[%s2049_s23 + $0xc0] sm:$0xff] %v1235_v15  ;;  %1238 = vst [vmem:[%s2049_s23 + $0xc8] sm:$0xff] %v1237_v25  ;;  %s3470_s23 = smov %s1245_s24 }
 0x1bc PF: > { %s3315_s9 = sand.u32 7, %s3504_s8   ;;  %s1587_s14 = sshll.u32 %s3226_s7, 6 }
 0x1bd   : > { %s3319_s15 = scalar_lea.vmem %s3094_s22, %s1587_s14 [#allocation11]   ;;  %s3322_s2 = scalar_lea.vmem %s3222_s6, %s1587_s14  }
 0x1be   : > { %p1576_p7 = scmp.le.s32.totalorder %s3315_s9, 0 }
 0x1bf   : > { %s2063_s11 = smov (!%p1576_p7), %s3322_s2   ;;  %s2067_s25 = smov (!%p1576_p7), %s3319_s15  }
 0x1c0   : > { %1381 = sbr.rel (%p1576_p7) target bundleno = 465 (0x1d1), region = 169  ;;  %s2071_s29 = smov (!%p1576_p7), 0  }
 0x1c1   : > { %s2075_s5 = smov (!%p1576_p7), 0  }
 0x1c7 LB: >> { %v1262_v46 = vld [vmem:[%s2069_s25] sm:$0xff]  ;;  %s1268_s22 = sadd.s32 1, %s2073_s29  ;;  %s1256_s5 = sadd.s32 1, %s2077_s5   ;;  %s2077_s5 = sphi %s2075_s5, %s1256_s5   ;;  %s2073_s29 = sphi %s2071_s29, %s2072_s29   ;;  %s2069_s25 = sphi %s2067_s25, %s1273_s25   ;;  %s2065_s11 = sphi %s2063_s11, %s1274_s11  }
 0x1c8   : >> { %v1264_v45 = vld [vmem:[%s2069_s25 + $0x40] sm:$0xff]  ;;  %1263 = vst [vmem:[%s2065_s11] sm:$0xff] %v1262_v46  ;;  %p1269_p2 = scmp.ge.s32.totalorder %s1268_s22, %s3315_s9  ;;  %p1255_p4 = scmp.ge.s32.totalorder %s1256_s5, %s3315_s9 }
 0x1c9   : >> { %v1266_v28 = vld [vmem:[%s2069_s25 + $0x80] sm:$0xff]  ;;  %1265 = vst [vmem:[%s2065_s11 + $0x48] sm:$0xff] %v1264_v45 }
 0x1ca   : >> { %1267 = vst [vmem:[%s2065_s11 + $0x90] sm:$0xff] %v1266_v28  ;;  %s3508_s22 = smov (%p1269_p2, %s1268_s22), 0  ;;  %1258 = sbr.rel (!%p1255_p4) target bundleno = 455 (0x1c7), region = 175 }
 0x1cb   : >> { %s1577_s8 = sshll.u32 %s3508_s22, 3  ;;  %s2072_s29 = smov %s3508_s22  }
 0x1cc   : >> { %s1273_s25 = scalar_lea.vmem %s3319_s15, %s1577_s8 [#allocation11]   ;;  %s1274_s11 = scalar_lea.vmem %s3322_s2, %s1577_s8  }
 0x1d1 PF: > { %s22_s27 = sadd.s32 1, %s2045_s27   ;;  %s3474_s20 = sld [smem:[#allocation21_spill]] }
 0x1d2   : > { %p3332_p3 = scmp.ge.s32.totalorder %s22_s27, 6   ;;  %s3475_s6 = sld [smem:[#allocation16_spill]] }
 0x1d3   : > { %s3476_s22 = sld [smem:[#allocation22_spill]]  ;;  %s3477_s23 = sld [smem:[#allocation18_spill]] }
 0x1d4   : > { %s3478_s25 = sld [smem:[#allocation19_spill]]  ;;  %s3479_s12 = sld [smem:[#allocation20_spill]] }
 0x1d5   : > { %s3480_s15 = smov %s2001_s16  ;;  %s3482_s17 = smov %s2009_s18 }
 0x1d6   : > { %s3483_s18 = smov %s2013_s19  ;;  %s3484_s19 = smov %s2316_s10 }
 0x1d7   : > { %s3481_s16 = smov %s3474_s20  ;;  %s3485_s20 = smov %s2021_s21 }
 0x1d8   : > { %s3486_s21 = smov %s3475_s6  ;;  %s3487_s24 = smov %s2041_s26 }
 0x1d9   :  { %21 = sbr.rel (!%p3332_p3) target bundleno = 17 (0x11), region = 186 }
 0x1da   : > { %s3488_s26 = smov %s3479_s12 }
 0x1e0   :  { %1290 = vsyncpa [#allocation4], 1 }
 0x1e1   :  { %1292 = vsyncpa [#allocation4 + $0x1], 1 }
 0x1e2   :  { %1293 = vsyncpa [#allocation10], 1 }
 0x1e3   :  { %1295 = vsyncpa [#allocation10 + $0x1], 1 }
 0x1e4   :  { %1296 = vsyncpa [#allocation5], 1 }
 0x1e5   :  { %1298 = vsyncpa [#allocation5 + $0x1], 1 }
 0x1e6   :  { %1299 = vsyncpa [#allocation7], 1 }

</bundles_post_ra>
